<compile_context>
chip_gen: v5e
topology: v5e:2x2
jax: 0.10.0
libtpu: 0.0.40
codegen_flags: <defaults>
</compile_context>

<pallas_src>
import functools

import jax
import jax.numpy as jnp
from jax.experimental import pallas as pl
from jax.experimental.pallas import tpu as pltpu

SH_C0 = 0.28209479177387814
SH_C1 = 0.4886025119029199
SH_C2 = (1.0925484305920792, -1.0925484305920792, 0.31539156525252005,
         -1.0925484305920792, 0.5462742152960396)
SH_C3 = (-0.5900435899266435, 2.890611442640554, -0.4570457994644658,
         0.3731763325901154, -0.4570457994644658, 1.445305721320277,
         -0.5900435899266435)

LANES = 128


def _sh2rgb_kernel(cam_ref, shs_ref, xyz_ref, rbwd_ref, out_ref, *,
                   active_deg, cano_view_dir, chunk_r):
    tile_r = out_ref.shape[1]
    n_chunks = tile_r // chunk_r

    # Hoist the camera-center splat out of the chunk loop (no per-iter
    # broadcast_in_dim).  3 values x (chunk_r, 128) f32 held in vregs.
    ones = jnp.ones((chunk_r, LANES), jnp.float32)
    cx = cam_ref[0] * ones
    cy = cam_ref[1] * ones
    cz = cam_ref[2] * ones

    @pl.loop(0, n_chunks)
    def _(ci):
        r0 = pl.multiple_of(ci * chunk_r, chunk_r)
        rs = pl.ds(r0, chunk_r)

        # dir_pp = normalize(xyz - camera_center)
        x = xyz_ref[0, rs, :] - cx
        y = xyz_ref[1, rs, :] - cy
        z = xyz_ref[2, rs, :] - cz
        # NOTE: reference uses /(norm + 1e-12); rsqrt(d2 + 1e-24) matches to
        # f32 roundoff for any non-degenerate direction.
        inv = jax.lax.rsqrt(x * x + y * y + z * z + 1e-24)
        x, y, z = x * inv, y * inv, z * inv

        if cano_view_dir:
            # dir <- R_bwd @ dir   (per-gaussian 3x3, elementwise on rows/lanes)
            r = [[rbwd_ref[i, j, rs, :].astype(jnp.float32) for j in range(3)]
                 for i in range(3)]
            nx = r[0][0] * x + r[0][1] * y + r[0][2] * z
            ny = r[1][0] * x + r[1][1] * y + r[1][2] * z
            nz = r[2][0] * x + r[2][1] * y + r[2][2] * z
            x, y, z = nx, ny, nz

        # SH basis (pre-multiplied by the constants), computed ONCE and reused
        # across the 3 color channels.
        basis = []
        if active_deg > 0:
            basis += [-SH_C1 * y, SH_C1 * z, -SH_C1 * x]
        if active_deg > 1:
            xx, yy, zz = x * x, y * y, z * z
            xy, yz, xz = x * y, y * z, x * z
            basis += [SH_C2[0] * xy,
                      SH_C2[1] * yz,
                      SH_C2[2] * (2.0 * zz - xx - yy),
                      SH_C2[3] * xz,
                      SH_C2[4] * (xx - yy)]
        if active_deg > 2:
            basis += [SH_C3[0] * y * (3.0 * xx - yy),
                      SH_C3[1] * xy * z,
                      SH_C3[2] * y * (4.0 * zz - xx - yy),
                      SH_C3[3] * z * (2.0 * zz - 3.0 * xx - 3.0 * yy),
                      SH_C3[4] * x * (4.0 * zz - xx - yy),
                      SH_C3[5] * z * (xx - yy),
                      SH_C3[6] * x * (xx - yy - 3.0 * zz)]

        for c in range(3):  # static unroll over rgb channels
            res = SH_C0 * shs_ref[c, 0, rs, :].astype(jnp.float32)
            for k, b in enumerate(basis):
                res = res + b * shs_ref[c, k + 1, rs, :].astype(jnp.float32)
            # colors_precomp = clamp_min(sh2rgb + 0.5, 0.0)
            out_ref[c, rs, :] = jnp.maximum(res + 0.5, 0.0)


def pack_gaussians(features, xyz, fwd_transform, *, tile_rows=512,
                   chunk_rows=None, shs_dtype=jnp.bfloat16,
                   rot_dtype=jnp.bfloat16):
    """Per-scene packing into the kernel layout.

    Static part (only camera_center changes per frame) -- cache the result at
    scene load / whenever gaussian params change so the transposes do not burn
    HBM bandwidth every frame.  bf16 storage for shs/rbwd halves HBM traffic;
    in-kernel arithmetic stays f32.
    """
    N, K, C = features.shape
    assert C == 3
    if chunk_rows is None:
        # bf16 packs 2 rows per sublane -> slice on 16-row (one packed vreg)
        # boundaries; f32 on 8-row boundaries.
        chunk_rows = 16 if jnp.dtype(shs_dtype).itemsize < 4 else 8
    assert tile_rows % chunk_rows == 0

    r_needed = pl.cdiv(N, LANES)
    r_needed = pl.cdiv(r_needed, chunk_rows) * chunk_rows
    tile_r = min(tile_rows, r_needed)
    r_total = pl.cdiv(r_needed, tile_r) * tile_r
    n_pad = r_total * LANES

    def pad_n(a):
        return jnp.pad(a, [(0, n_pad - N)] + [(0, 0)] * (a.ndim - 1))

    f = pad_n(features.astype(jnp.float32))
    x = pad_n(xyz.astype(jnp.float32))
    t = pad_n(fwd_transform.astype(jnp.float32))

    shs = jnp.transpose(f, (2, 1, 0)).reshape(3, K, r_total, LANES).astype(shs_dtype)
    xyz_p = jnp.transpose(x, (1, 0)).reshape(3, r_total, LANES)  # stays f32
    # R_bwd[i, j, n] = T_fwd[n, j, i]  (transpose of the 3x3 block)
    rbwd = jnp.transpose(t[:, :3, :3], (2, 1, 0)).reshape(3, 3, r_total, LANES)
    rbwd = rbwd.astype(rot_dtype)

    return dict(shs=shs, xyz=xyz_p, rbwd=rbwd, n=N, K=K,
                r_total=r_total, tile_r=tile_r, chunk_r=chunk_rows)


def unpack_colors(packed_out, n):
    """(3, R, 128) f32 -> (N, 3).  Costs an extra HBM round trip; only use it
    if the downstream consumer cannot take the packed layout."""
    r_total = packed_out.shape[1]
    return jnp.transpose(packed_out.reshape(3, r_total * LANES), (1, 0))[:n]


def sh2rgb_from_packed(packed, camera_center, active_sh_degree,
                       cano_view_dir=True, return_packed=False):
    shs, xyz_p, rbwd = packed["shs"], packed["xyz"], packed["rbwd"]
    N, K = packed["n"], packed["K"]
    r_total, tile_r, chunk_r = packed["r_total"], packed["tile_r"], packed["chunk_r"]
    assert K >= (int(active_sh_degree) + 1) ** 2

    cam = camera_center.astype(jnp.float32)  # (3,) scalar prefetch (SMEM)

    kernel = functools.partial(_sh2rgb_kernel,
                               active_deg=int(active_sh_degree),
                               cano_view_dir=bool(cano_view_dir),
                               chunk_r=chunk_r)

    # VMEM budget from the actual per-step footprint (double-buffered inputs
    # and output), clamped to [32, 64) MiB so v7x's 64 MiB part stays safe.
    bytes_per_step = (3 * K * tile_r * LANES * jnp.dtype(shs.dtype).itemsize
                      + 3 * 3 * tile_r * LANES * jnp.dtype(rbwd.dtype).itemsize
                      + 3 * tile_r * LANES * 4        # xyz (f32)
                      + 3 * tile_r * LANES * 4)       # out (f32)
    vmem_limit = int(min(60 * 1024 * 1024,
                         max(32 * 1024 * 1024, 2.5 * bytes_per_step)))

    out = pl.pallas_call(
        kernel,
        out_shape=jax.ShapeDtypeStruct((3, r_total, LANES), jnp.float32),
        grid_spec=pltpu.PrefetchScalarGridSpec(
            num_scalar_prefetch=1,
            grid=(r_total // tile_r,),
            in_specs=[
                pl.BlockSpec((3, K, tile_r, LANES), lambda i, cam_ref: (0, 0, i, 0)),
                pl.BlockSpec((3, tile_r, LANES), lambda i, cam_ref: (0, i, 0)),
                pl.BlockSpec((3, 3, tile_r, LANES), lambda i, cam_ref: (0, 0, i, 0)),
            ],
            out_specs=pl.BlockSpec((3, tile_r, LANES), lambda i, cam_ref: (0, i, 0)),
        ),
        compiler_params=pltpu.CompilerParams(
            dimension_semantics=("parallel",),   # megacore sharding on v7x
            vmem_limit_bytes=vmem_limit),
    )(cam, shs, xyz_p, rbwd)

    if return_packed:
        return out            # (3, r_total, 128); rows >= ceil(N/128) are pad
    return unpack_colors(out, N)


def sh2rgb_pallas(features, xyz, camera_center, fwd_transform, active_sh_degree,
                  cano_view_dir=True, **pack_kwargs):
    """Convenience one-shot path: pack + run, returning (N, 3) like the module.
    For per-frame use, call pack_gaussians() once per scene and
    sh2rgb_from_packed(..., return_packed=True) per frame."""
    packed = pack_gaussians(features, xyz, fwd_transform, **pack_kwargs)
    return sh2rgb_from_packed(packed, camera_center, active_sh_degree,
                              cano_view_dir)


# ----------------------- pure-JAX reference (for verification) -----------------------
def _eval_sh_ref(deg, sh, dirs):
    # sh: (N, 3, K), dirs: (N, 3)
    x, y, z = dirs[:, 0:1], dirs[:, 1:2], dirs[:, 2:3]
    result = SH_C0 * sh[..., 0]
    if deg > 0:
        result = result - SH_C1 * y * sh[..., 1] + SH_C1 * z * sh[..., 2] - SH_C1 * x * sh[..., 3]
    if deg > 1:
        xx, yy, zz = x * x, y * y, z * z
        xy, yz, xz = x * y, y * z, x * z
        result = (result
                  + SH_C2[0] * xy * sh[..., 4]
                  + SH_C2[1] * yz * sh[..., 5]
                  + SH_C2[2] * (2.0 * zz - xx - yy) * sh[..., 6]
                  + SH_C2[3] * xz * sh[..., 7]
                  + SH_C2[4] * (xx - yy) * sh[..., 8])
        if deg > 2:
            result = (result
                      + SH_C3[0] * y * (3.0 * xx - yy) * sh[..., 9]
                      + SH_C3[1] * xy * z * sh[..., 10]
                      + SH_C3[2] * y * (4.0 * zz - xx - yy) * sh[..., 11]
                      + SH_C3[3] * z * (2.0 * zz - 3.0 * xx - 3.0 * yy) * sh[..., 12]
                      + SH_C3[4] * x * (4.0 * zz - xx - yy) * sh[..., 13]
                      + SH_C3[5] * z * (xx - yy) * sh[..., 14]
                      + SH_C3[6] * x * (xx - yy - 3.0 * zz) * sh[..., 15])
    return result


def _reference(features, xyz, camera_center, fwd_transform, deg, cano_view_dir):
    shs_view = jnp.transpose(features, (0, 2, 1))                          # (N, 3, K)
    dir_pp = xyz - camera_center[None, :]
    dir_pp = dir_pp / (jnp.linalg.norm(dir_pp, axis=1, keepdims=True) + 1e-12)
    if cano_view_dir:
        r_bwd = jnp.transpose(fwd_transform[:, :3, :3], (0, 2, 1))
        dir_pp = jnp.einsum('nij,nj->ni', r_bwd, dir_pp)
    rgb = _eval_sh_ref(deg, shs_view, dir_pp)
    return jnp.maximum(rgb + 0.5, 0.0)


if __name__ == "__main__":
    key = jax.random.PRNGKey(0)
    N = 512                       # number of gaussians (small demo size)
    max_sh_degree = 3
    active_sh_degree = 3
    K = (max_sh_degree + 1) ** 2  # 16 SH coefficients

    k1, k2, k3, k4 = jax.random.split(key, 4)
    features = 0.5 * jax.random.normal(k1, (N, K, 3), jnp.float32)       # gaussians.get_features
    xyz = 2.0 * jax.random.normal(k2, (N, 3), jnp.float32)               # gaussians.get_xyz
    camera_center = jax.random.normal(k3, (3,), jnp.float32)             # camera.camera_center
    # deterministic per-gaussian forward transform (identity + small perturbation in 3x3 block)
    r_block = jnp.eye(3, dtype=jnp.float32)[None] + \
        0.1 * jax.random.normal(k4, (N, 3, 3), jnp.float32)
    fwd_transform = jnp.tile(jnp.eye(4, dtype=jnp.float32)[None], (N, 1, 1))
    fwd_transform = fwd_transform.at[:, :3, :3].set(r_block)             # gaussians.fwd_transform

    # pack once (per-scene, bf16 storage by default), run per-frame kernel and
    # keep the packed output layout (no post-kernel transpose on the hot path).
    packed = pack_gaussians(features, xyz, fwd_transform)
    out_packed = sh2rgb_from_packed(packed, camera_center,
                                    active_sh_degree=active_sh_degree,
                                    cano_view_dir=True, return_packed=True)
    out_packed = jax.block_until_ready(out_packed)
    out = unpack_colors(out_packed, N)                                    # only for verification

    # Tight check vs a reference using the same bf16-quantized storage
    # (verifies the kernel arithmetic; arithmetic is f32 in both).
    features_q = features.astype(jnp.bfloat16).astype(jnp.float32)
    fwd_q = fwd_transform.at[:, :3, :3].set(
        fwd_transform[:, :3, :3].astype(jnp.bfloat16).astype(jnp.float32))
    ref_q = _reference(features_q, xyz, camera_center, fwd_q,
                       deg=active_sh_degree, cano_view_dir=True)
    # Loose check vs the full-precision reference (bf16 storage error bound).
    ref_full = _reference(features, xyz, camera_center, fwd_transform,
                          deg=active_sh_degree, cano_view_dir=True)

    assert out.shape == (N, 3) and out.dtype == jnp.float32
    assert jnp.allclose(out, ref_q, atol=1e-3, rtol=1e-3), "mismatch vs quantized-input reference"
    assert jnp.allclose(out, ref_full, atol=5e-2, rtol=5e-2), "mismatch vs f32 reference"
    print("KERNEL_OK")
</pallas_src>

<mosaic_0001>
module attributes {stable_mosaic.version = 11 : i64} {
  func.func @_sh2rgb_kernel(%arg0: i32, %arg1: memref<3xf32, #tpu.memory_space<smem>>, %arg2: memref<3x16x16x128xbf16, #tpu.memory_space<vmem>>, %arg3: memref<3x16x128xf32, #tpu.memory_space<vmem>>, %arg4: memref<3x3x16x128xbf16, #tpu.memory_space<vmem>>, %arg5: memref<3x16x128xf32, #tpu.memory_space<vmem>>) attributes {dimension_semantics = [#tpu.dimension_semantics<parallel>], iteration_bounds = array<i64: 1>, scalar_prefetch = 1 : i64, scratch_operands = 0 : i64, tpu.core_type = #tpu.core_type<tc>, window_params = [{transform_indices = @transform_0, window_bounds = array<i64: 3, 16, 16, 128>}, {transform_indices = @transform_1, window_bounds = array<i64: 3, 16, 128>}, {transform_indices = @transform_2, window_bounds = array<i64: 3, 3, 16, 128>}, {transform_indices = @transform_3, window_bounds = array<i64: 3, 16, 128>}]} {
    %cst = arith.constant 1.000000e+00 : f32
    %0 = vector.broadcast %cst : f32 to vector<16x128xf32>
    %c0 = arith.constant 0 : index
    %1 = memref.load %arg1[%c0] : memref<3xf32, #tpu.memory_space<smem>>
    %2 = vector.broadcast %1 : f32 to vector<16x128xf32>
    %3 = arith.mulf %2, %0 : vector<16x128xf32>
    %c1 = arith.constant 1 : index
    %4 = memref.load %arg1[%c1] : memref<3xf32, #tpu.memory_space<smem>>
    %5 = vector.broadcast %4 : f32 to vector<16x128xf32>
    %6 = arith.mulf %5, %0 : vector<16x128xf32>
    %c2 = arith.constant 2 : index
    %7 = memref.load %arg1[%c2] : memref<3xf32, #tpu.memory_space<smem>>
    %8 = vector.broadcast %7 : f32 to vector<16x128xf32>
    %9 = arith.mulf %8, %0 : vector<16x128xf32>
    %c0_i32 = arith.constant 0 : i32
    %c1_i32 = arith.constant 1 : i32
    %10 = arith.muli %c0_i32, %c1_i32 : i32
    %c0_i32_0 = arith.constant 0 : i32
    %11 = arith.addi %c0_i32_0, %10 : i32
    %c16_i32 = arith.constant 16 : i32
    %12 = arith.muli %11, %c16_i32 : i32
    %13 = tpu.assume_multiple %12, 16 : i32
    %c0_1 = arith.constant 0 : index
    %14 = arith.index_cast %13 : i32 to index
    %c0_2 = arith.constant 0 : index
    %15 = vector.load %arg3[%c0_1, %14, %c0_2] : memref<3x16x128xf32, #tpu.memory_space<vmem>>, vector<1x16x128xf32>
    %16 = vector.shape_cast %15 : vector<1x16x128xf32> to vector<16x128xf32>
    %17 = arith.subf %16, %3 : vector<16x128xf32>
    %c1_3 = arith.constant 1 : index
    %18 = arith.index_cast %13 : i32 to index
    %c0_4 = arith.constant 0 : index
    %19 = vector.load %arg3[%c1_3, %18, %c0_4] : memref<3x16x128xf32, #tpu.memory_space<vmem>>, vector<1x16x128xf32>
    %20 = vector.shape_cast %19 : vector<1x16x128xf32> to vector<16x128xf32>
    %21 = arith.subf %20, %6 : vector<16x128xf32>
    %c2_5 = arith.constant 2 : index
    %22 = arith.index_cast %13 : i32 to index
    %c0_6 = arith.constant 0 : index
    %23 = vector.load %arg3[%c2_5, %22, %c0_6] : memref<3x16x128xf32, #tpu.memory_space<vmem>>, vector<1x16x128xf32>
    %24 = vector.shape_cast %23 : vector<1x16x128xf32> to vector<16x128xf32>
    %25 = arith.subf %24, %9 : vector<16x128xf32>
    %26 = arith.mulf %17, %17 : vector<16x128xf32>
    %27 = arith.mulf %21, %21 : vector<16x128xf32>
    %28 = arith.addf %26, %27 : vector<16x128xf32>
    %29 = arith.mulf %25, %25 : vector<16x128xf32>
    %30 = arith.addf %28, %29 : vector<16x128xf32>
    %cst_7 = arith.constant 1.000000e-24 : f32
    %31 = vector.broadcast %cst_7 : f32 to vector<16x128xf32>
    %32 = arith.addf %30, %31 : vector<16x128xf32>
    %33 = math.rsqrt %32 : vector<16x128xf32>
    %34 = arith.mulf %17, %33 : vector<16x128xf32>
    %35 = arith.mulf %21, %33 : vector<16x128xf32>
    %36 = arith.mulf %25, %33 : vector<16x128xf32>
    %c0_8 = arith.constant 0 : index
    %c0_9 = arith.constant 0 : index
    %37 = arith.index_cast %13 : i32 to index
    %c0_10 = arith.constant 0 : index
    %38 = vector.load %arg4[%c0_8, %c0_9, %37, %c0_10] : memref<3x3x16x128xbf16, #tpu.memory_space<vmem>>, vector<1x1x16x128xbf16>
    %39 = vector.shape_cast %38 : vector<1x1x16x128xbf16> to vector<16x128xbf16>
    %40 = arith.extf %39 : vector<16x128xbf16> to vector<16x128xf32>
    %c0_11 = arith.constant 0 : index
    %c1_12 = arith.constant 1 : index
    %41 = arith.index_cast %13 : i32 to index
    %c0_13 = arith.constant 0 : index
    %42 = vector.load %arg4[%c0_11, %c1_12, %41, %c0_13] : memref<3x3x16x128xbf16, #tpu.memory_space<vmem>>, vector<1x1x16x128xbf16>
    %43 = vector.shape_cast %42 : vector<1x1x16x128xbf16> to vector<16x128xbf16>
    %44 = arith.extf %43 : vector<16x128xbf16> to vector<16x128xf32>
    %c0_14 = arith.constant 0 : index
    %c2_15 = arith.constant 2 : index
    %45 = arith.index_cast %13 : i32 to index
    %c0_16 = arith.constant 0 : index
    %46 = vector.load %arg4[%c0_14, %c2_15, %45, %c0_16] : memref<3x3x16x128xbf16, #tpu.memory_space<vmem>>, vector<1x1x16x128xbf16>
    %47 = vector.shape_cast %46 : vector<1x1x16x128xbf16> to vector<16x128xbf16>
    %48 = arith.extf %47 : vector<16x128xbf16> to vector<16x128xf32>
    %c1_17 = arith.constant 1 : index
    %c0_18 = arith.constant 0 : index
    %49 = arith.index_cast %13 : i32 to index
    %c0_19 = arith.constant 0 : index
    %50 = vector.load %arg4[%c1_17, %c0_18, %49, %c0_19] : memref<3x3x16x128xbf16, #tpu.memory_space<vmem>>, vector<1x1x16x128xbf16>
    %51 = vector.shape_cast %50 : vector<1x1x16x128xbf16> to vector<16x128xbf16>
    %52 = arith.extf %51 : vector<16x128xbf16> to vector<16x128xf32>
    %c1_20 = arith.constant 1 : index
    %c1_21 = arith.constant 1 : index
    %53 = arith.index_cast %13 : i32 to index
    %c0_22 = arith.constant 0 : index
    %54 = vector.load %arg4[%c1_20, %c1_21, %53, %c0_22] : memref<3x3x16x128xbf16, #tpu.memory_space<vmem>>, vector<1x1x16x128xbf16>
    %55 = vector.shape_cast %54 : vector<1x1x16x128xbf16> to vector<16x128xbf16>
    %56 = arith.extf %55 : vector<16x128xbf16> to vector<16x128xf32>
    %c1_23 = arith.constant 1 : index
    %c2_24 = arith.constant 2 : index
    %57 = arith.index_cast %13 : i32 to index
    %c0_25 = arith.constant 0 : index
    %58 = vector.load %arg4[%c1_23, %c2_24, %57, %c0_25] : memref<3x3x16x128xbf16, #tpu.memory_space<vmem>>, vector<1x1x16x128xbf16>
    %59 = vector.shape_cast %58 : vector<1x1x16x128xbf16> to vector<16x128xbf16>
    %60 = arith.extf %59 : vector<16x128xbf16> to vector<16x128xf32>
    %c2_26 = arith.constant 2 : index
    %c0_27 = arith.constant 0 : index
    %61 = arith.index_cast %13 : i32 to index
    %c0_28 = arith.constant 0 : index
    %62 = vector.load %arg4[%c2_26, %c0_27, %61, %c0_28] : memref<3x3x16x128xbf16, #tpu.memory_space<vmem>>, vector<1x1x16x128xbf16>
    %63 = vector.shape_cast %62 : vector<1x1x16x128xbf16> to vector<16x128xbf16>
    %64 = arith.extf %63 : vector<16x128xbf16> to vector<16x128xf32>
    %c2_29 = arith.constant 2 : index
    %c1_30 = arith.constant 1 : index
    %65 = arith.index_cast %13 : i32 to index
    %c0_31 = arith.constant 0 : index
    %66 = vector.load %arg4[%c2_29, %c1_30, %65, %c0_31] : memref<3x3x16x128xbf16, #tpu.memory_space<vmem>>, vector<1x1x16x128xbf16>
    %67 = vector.shape_cast %66 : vector<1x1x16x128xbf16> to vector<16x128xbf16>
    %68 = arith.extf %67 : vector<16x128xbf16> to vector<16x128xf32>
    %c2_32 = arith.constant 2 : index
    %c2_33 = arith.constant 2 : index
    %69 = arith.index_cast %13 : i32 to index
    %c0_34 = arith.constant 0 : index
    %70 = vector.load %arg4[%c2_32, %c2_33, %69, %c0_34] : memref<3x3x16x128xbf16, #tpu.memory_space<vmem>>, vector<1x1x16x128xbf16>
    %71 = vector.shape_cast %70 : vector<1x1x16x128xbf16> to vector<16x128xbf16>
    %72 = arith.extf %71 : vector<16x128xbf16> to vector<16x128xf32>
    %73 = arith.mulf %40, %34 : vector<16x128xf32>
    %74 = arith.mulf %44, %35 : vector<16x128xf32>
    %75 = arith.addf %73, %74 : vector<16x128xf32>
    %76 = arith.mulf %48, %36 : vector<16x128xf32>
    %77 = arith.addf %75, %76 : vector<16x128xf32>
    %78 = arith.mulf %52, %34 : vector<16x128xf32>
    %79 = arith.mulf %56, %35 : vector<16x128xf32>
    %80 = arith.addf %78, %79 : vector<16x128xf32>
    %81 = arith.mulf %60, %36 : vector<16x128xf32>
    %82 = arith.addf %80, %81 : vector<16x128xf32>
    %83 = arith.mulf %64, %34 : vector<16x128xf32>
    %84 = arith.mulf %68, %35 : vector<16x128xf32>
    %85 = arith.addf %83, %84 : vector<16x128xf32>
    %86 = arith.mulf %72, %36 : vector<16x128xf32>
    %87 = arith.addf %85, %86 : vector<16x128xf32>
    %cst_35 = arith.constant -0.488602519 : f32
    %88 = vector.broadcast %cst_35 : f32 to vector<16x128xf32>
    %89 = arith.mulf %88, %82 : vector<16x128xf32>
    %cst_36 = arith.constant 0.488602519 : f32
    %90 = vector.broadcast %cst_36 : f32 to vector<16x128xf32>
    %91 = arith.mulf %90, %87 : vector<16x128xf32>
    %cst_37 = arith.constant -0.488602519 : f32
    %92 = vector.broadcast %cst_37 : f32 to vector<16x128xf32>
    %93 = arith.mulf %92, %77 : vector<16x128xf32>
    %94 = arith.mulf %77, %77 : vector<16x128xf32>
    %95 = arith.mulf %82, %82 : vector<16x128xf32>
    %96 = arith.mulf %87, %87 : vector<16x128xf32>
    %97 = arith.mulf %77, %82 : vector<16x128xf32>
    %98 = arith.mulf %82, %87 : vector<16x128xf32>
    %99 = arith.mulf %77, %87 : vector<16x128xf32>
    %cst_38 = arith.constant 1.09254849 : f32
    %100 = vector.broadcast %cst_38 : f32 to vector<16x128xf32>
    %101 = arith.mulf %100, %97 : vector<16x128xf32>
    %cst_39 = arith.constant -1.09254849 : f32
    %102 = vector.broadcast %cst_39 : f32 to vector<16x128xf32>
    %103 = arith.mulf %102, %98 : vector<16x128xf32>
    %cst_40 = arith.constant 2.000000e+00 : f32
    %104 = vector.broadcast %cst_40 : f32 to vector<16x128xf32>
    %105 = arith.mulf %104, %96 : vector<16x128xf32>
    %106 = arith.subf %105, %94 : vector<16x128xf32>
    %107 = arith.subf %106, %95 : vector<16x128xf32>
    %cst_41 = arith.constant 0.31539157 : f32
    %108 = vector.broadcast %cst_41 : f32 to vector<16x128xf32>
    %109 = arith.mulf %108, %107 : vector<16x128xf32>
    %cst_42 = arith.constant -1.09254849 : f32
    %110 = vector.broadcast %cst_42 : f32 to vector<16x128xf32>
    %111 = arith.mulf %110, %99 : vector<16x128xf32>
    %112 = arith.subf %94, %95 : vector<16x128xf32>
    %cst_43 = arith.constant 0.546274245 : f32
    %113 = vector.broadcast %cst_43 : f32 to vector<16x128xf32>
    %114 = arith.mulf %113, %112 : vector<16x128xf32>
    %cst_44 = arith.constant -0.590043604 : f32
    %115 = vector.broadcast %cst_44 : f32 to vector<16x128xf32>
    %116 = arith.mulf %115, %82 : vector<16x128xf32>
    %cst_45 = arith.constant 3.000000e+00 : f32
    %117 = vector.broadcast %cst_45 : f32 to vector<16x128xf32>
    %118 = arith.mulf %117, %94 : vector<16x128xf32>
    %119 = arith.subf %118, %95 : vector<16x128xf32>
    %120 = arith.mulf %116, %119 : vector<16x128xf32>
    %cst_46 = arith.constant 2.89061141 : f32
    %121 = vector.broadcast %cst_46 : f32 to vector<16x128xf32>
    %122 = arith.mulf %121, %97 : vector<16x128xf32>
    %123 = arith.mulf %122, %87 : vector<16x128xf32>
    %cst_47 = arith.constant -0.457045794 : f32
    %124 = vector.broadcast %cst_47 : f32 to vector<16x128xf32>
    %125 = arith.mulf %124, %82 : vector<16x128xf32>
    %cst_48 = arith.constant 4.000000e+00 : f32
    %126 = vector.broadcast %cst_48 : f32 to vector<16x128xf32>
    %127 = arith.mulf %126, %96 : vector<16x128xf32>
    %128 = arith.subf %127, %94 : vector<16x128xf32>
    %129 = arith.subf %128, %95 : vector<16x128xf32>
    %130 = arith.mulf %125, %129 : vector<16x128xf32>
    %cst_49 = arith.constant 0.373176336 : f32
    %131 = vector.broadcast %cst_49 : f32 to vector<16x128xf32>
    %132 = arith.mulf %131, %87 : vector<16x128xf32>
    %cst_50 = arith.constant 2.000000e+00 : f32
    %133 = vector.broadcast %cst_50 : f32 to vector<16x128xf32>
    %134 = arith.mulf %133, %96 : vector<16x128xf32>
    %cst_51 = arith.constant 3.000000e+00 : f32
    %135 = vector.broadcast %cst_51 : f32 to vector<16x128xf32>
    %136 = arith.mulf %135, %94 : vector<16x128xf32>
    %137 = arith.subf %134, %136 : vector<16x128xf32>
    %cst_52 = arith.constant 3.000000e+00 : f32
    %138 = vector.broadcast %cst_52 : f32 to vector<16x128xf32>
    %139 = arith.mulf %138, %95 : vector<16x128xf32>
    %140 = arith.subf %137, %139 : vector<16x128xf32>
    %141 = arith.mulf %132, %140 : vector<16x128xf32>
    %cst_53 = arith.constant -0.457045794 : f32
    %142 = vector.broadcast %cst_53 : f32 to vector<16x128xf32>
    %143 = arith.mulf %142, %77 : vector<16x128xf32>
    %cst_54 = arith.constant 4.000000e+00 : f32
    %144 = vector.broadcast %cst_54 : f32 to vector<16x128xf32>
    %145 = arith.mulf %144, %96 : vector<16x128xf32>
    %146 = arith.subf %145, %94 : vector<16x128xf32>
    %147 = arith.subf %146, %95 : vector<16x128xf32>
    %148 = arith.mulf %143, %147 : vector<16x128xf32>
    %cst_55 = arith.constant 1.44530571 : f32
    %149 = vector.broadcast %cst_55 : f32 to vector<16x128xf32>
    %150 = arith.mulf %149, %87 : vector<16x128xf32>
    %151 = arith.subf %94, %95 : vector<16x128xf32>
    %152 = arith.mulf %150, %151 : vector<16x128xf32>
    %cst_56 = arith.constant -0.590043604 : f32
    %153 = vector.broadcast %cst_56 : f32 to vector<16x128xf32>
    %154 = arith.mulf %153, %77 : vector<16x128xf32>
    %155 = arith.subf %94, %95 : vector<16x128xf32>
    %cst_57 = arith.constant 3.000000e+00 : f32
    %156 = vector.broadcast %cst_57 : f32 to vector<16x128xf32>
    %157 = arith.mulf %156, %96 : vector<16x128xf32>
    %158 = arith.subf %155, %157 : vector<16x128xf32>
    %159 = arith.mulf %154, %158 : vector<16x128xf32>
    %c0_58 = arith.constant 0 : index
    %c0_59 = arith.constant 0 : index
    %160 = arith.index_cast %13 : i32 to index
    %c0_60 = arith.constant 0 : index
    %161 = vector.load %arg2[%c0_58, %c0_59, %160, %c0_60] : memref<3x16x16x128xbf16, #tpu.memory_space<vmem>>, vector<1x1x16x128xbf16>
    %162 = vector.shape_cast %161 : vector<1x1x16x128xbf16> to vector<16x128xbf16>
    %163 = arith.extf %162 : vector<16x128xbf16> to vector<16x128xf32>
    %cst_61 = arith.constant 0.282094806 : f32
    %164 = vector.broadcast %cst_61 : f32 to vector<16x128xf32>
    %165 = arith.mulf %164, %163 : vector<16x128xf32>
    %c0_62 = arith.constant 0 : index
    %c1_63 = arith.constant 1 : index
    %166 = arith.index_cast %13 : i32 to index
    %c0_64 = arith.constant 0 : index
    %167 = vector.load %arg2[%c0_62, %c1_63, %166, %c0_64] : memref<3x16x16x128xbf16, #tpu.memory_space<vmem>>, vector<1x1x16x128xbf16>
    %168 = vector.shape_cast %167 : vector<1x1x16x128xbf16> to vector<16x128xbf16>
    %169 = arith.extf %168 : vector<16x128xbf16> to vector<16x128xf32>
    %170 = arith.mulf %89, %169 : vector<16x128xf32>
    %171 = arith.addf %165, %170 : vector<16x128xf32>
    %c0_65 = arith.constant 0 : index
    %c2_66 = arith.constant 2 : index
    %172 = arith.index_cast %13 : i32 to index
    %c0_67 = arith.constant 0 : index
    %173 = vector.load %arg2[%c0_65, %c2_66, %172, %c0_67] : memref<3x16x16x128xbf16, #tpu.memory_space<vmem>>, vector<1x1x16x128xbf16>
    %174 = vector.shape_cast %173 : vector<1x1x16x128xbf16> to vector<16x128xbf16>
    %175 = arith.extf %174 : vector<16x128xbf16> to vector<16x128xf32>
    %176 = arith.mulf %91, %175 : vector<16x128xf32>
    %177 = arith.addf %171, %176 : vector<16x128xf32>
    %c0_68 = arith.constant 0 : index
    %c3 = arith.constant 3 : index
    %178 = arith.index_cast %13 : i32 to index
    %c0_69 = arith.constant 0 : index
    %179 = vector.load %arg2[%c0_68, %c3, %178, %c0_69] : memref<3x16x16x128xbf16, #tpu.memory_space<vmem>>, vector<1x1x16x128xbf16>
    %180 = vector.shape_cast %179 : vector<1x1x16x128xbf16> to vector<16x128xbf16>
    %181 = arith.extf %180 : vector<16x128xbf16> to vector<16x128xf32>
    %182 = arith.mulf %93, %181 : vector<16x128xf32>
    %183 = arith.addf %177, %182 : vector<16x128xf32>
    %c0_70 = arith.constant 0 : index
    %c4 = arith.constant 4 : index
    %184 = arith.index_cast %13 : i32 to index
    %c0_71 = arith.constant 0 : index
    %185 = vector.load %arg2[%c0_70, %c4, %184, %c0_71] : memref<3x16x16x128xbf16, #tpu.memory_space<vmem>>, vector<1x1x16x128xbf16>
    %186 = vector.shape_cast %185 : vector<1x1x16x128xbf16> to vector<16x128xbf16>
    %187 = arith.extf %186 : vector<16x128xbf16> to vector<16x128xf32>
    %188 = arith.mulf %101, %187 : vector<16x128xf32>
    %189 = arith.addf %183, %188 : vector<16x128xf32>
    %c0_72 = arith.constant 0 : index
    %c5 = arith.constant 5 : index
    %190 = arith.index_cast %13 : i32 to index
    %c0_73 = arith.constant 0 : index
    %191 = vector.load %arg2[%c0_72, %c5, %190, %c0_73] : memref<3x16x16x128xbf16, #tpu.memory_space<vmem>>, vector<1x1x16x128xbf16>
    %192 = vector.shape_cast %191 : vector<1x1x16x128xbf16> to vector<16x128xbf16>
    %193 = arith.extf %192 : vector<16x128xbf16> to vector<16x128xf32>
    %194 = arith.mulf %103, %193 : vector<16x128xf32>
    %195 = arith.addf %189, %194 : vector<16x128xf32>
    %c0_74 = arith.constant 0 : index
    %c6 = arith.constant 6 : index
    %196 = arith.index_cast %13 : i32 to index
    %c0_75 = arith.constant 0 : index
    %197 = vector.load %arg2[%c0_74, %c6, %196, %c0_75] : memref<3x16x16x128xbf16, #tpu.memory_space<vmem>>, vector<1x1x16x128xbf16>
    %198 = vector.shape_cast %197 : vector<1x1x16x128xbf16> to vector<16x128xbf16>
    %199 = arith.extf %198 : vector<16x128xbf16> to vector<16x128xf32>
    %200 = arith.mulf %109, %199 : vector<16x128xf32>
    %201 = arith.addf %195, %200 : vector<16x128xf32>
    %c0_76 = arith.constant 0 : index
    %c7 = arith.constant 7 : index
    %202 = arith.index_cast %13 : i32 to index
    %c0_77 = arith.constant 0 : index
    %203 = vector.load %arg2[%c0_76, %c7, %202, %c0_77] : memref<3x16x16x128xbf16, #tpu.memory_space<vmem>>, vector<1x1x16x128xbf16>
    %204 = vector.shape_cast %203 : vector<1x1x16x128xbf16> to vector<16x128xbf16>
    %205 = arith.extf %204 : vector<16x128xbf16> to vector<16x128xf32>
    %206 = arith.mulf %111, %205 : vector<16x128xf32>
    %207 = arith.addf %201, %206 : vector<16x128xf32>
    %c0_78 = arith.constant 0 : index
    %c8 = arith.constant 8 : index
    %208 = arith.index_cast %13 : i32 to index
    %c0_79 = arith.constant 0 : index
    %209 = vector.load %arg2[%c0_78, %c8, %208, %c0_79] : memref<3x16x16x128xbf16, #tpu.memory_space<vmem>>, vector<1x1x16x128xbf16>
    %210 = vector.shape_cast %209 : vector<1x1x16x128xbf16> to vector<16x128xbf16>
    %211 = arith.extf %210 : vector<16x128xbf16> to vector<16x128xf32>
    %212 = arith.mulf %114, %211 : vector<16x128xf32>
    %213 = arith.addf %207, %212 : vector<16x128xf32>
    %c0_80 = arith.constant 0 : index
    %c9 = arith.constant 9 : index
    %214 = arith.index_cast %13 : i32 to index
    %c0_81 = arith.constant 0 : index
    %215 = vector.load %arg2[%c0_80, %c9, %214, %c0_81] : memref<3x16x16x128xbf16, #tpu.memory_space<vmem>>, vector<1x1x16x128xbf16>
    %216 = vector.shape_cast %215 : vector<1x1x16x128xbf16> to vector<16x128xbf16>
    %217 = arith.extf %216 : vector<16x128xbf16> to vector<16x128xf32>
    %218 = arith.mulf %120, %217 : vector<16x128xf32>
    %219 = arith.addf %213, %218 : vector<16x128xf32>
    %c0_82 = arith.constant 0 : index
    %c10 = arith.constant 10 : index
    %220 = arith.index_cast %13 : i32 to index
    %c0_83 = arith.constant 0 : index
    %221 = vector.load %arg2[%c0_82, %c10, %220, %c0_83] : memref<3x16x16x128xbf16, #tpu.memory_space<vmem>>, vector<1x1x16x128xbf16>
    %222 = vector.shape_cast %221 : vector<1x1x16x128xbf16> to vector<16x128xbf16>
    %223 = arith.extf %222 : vector<16x128xbf16> to vector<16x128xf32>
    %224 = arith.mulf %123, %223 : vector<16x128xf32>
    %225 = arith.addf %219, %224 : vector<16x128xf32>
    %c0_84 = arith.constant 0 : index
    %c11 = arith.constant 11 : index
    %226 = arith.index_cast %13 : i32 to index
    %c0_85 = arith.constant 0 : index
    %227 = vector.load %arg2[%c0_84, %c11, %226, %c0_85] : memref<3x16x16x128xbf16, #tpu.memory_space<vmem>>, vector<1x1x16x128xbf16>
    %228 = vector.shape_cast %227 : vector<1x1x16x128xbf16> to vector<16x128xbf16>
    %229 = arith.extf %228 : vector<16x128xbf16> to vector<16x128xf32>
    %230 = arith.mulf %130, %229 : vector<16x128xf32>
    %231 = arith.addf %225, %230 : vector<16x128xf32>
    %c0_86 = arith.constant 0 : index
    %c12 = arith.constant 12 : index
    %232 = arith.index_cast %13 : i32 to index
    %c0_87 = arith.constant 0 : index
    %233 = vector.load %arg2[%c0_86, %c12, %232, %c0_87] : memref<3x16x16x128xbf16, #tpu.memory_space<vmem>>, vector<1x1x16x128xbf16>
    %234 = vector.shape_cast %233 : vector<1x1x16x128xbf16> to vector<16x128xbf16>
    %235 = arith.extf %234 : vector<16x128xbf16> to vector<16x128xf32>
    %236 = arith.mulf %141, %235 : vector<16x128xf32>
    %237 = arith.addf %231, %236 : vector<16x128xf32>
    %c0_88 = arith.constant 0 : index
    %c13 = arith.constant 13 : index
    %238 = arith.index_cast %13 : i32 to index
    %c0_89 = arith.constant 0 : index
    %239 = vector.load %arg2[%c0_88, %c13, %238, %c0_89] : memref<3x16x16x128xbf16, #tpu.memory_space<vmem>>, vector<1x1x16x128xbf16>
    %240 = vector.shape_cast %239 : vector<1x1x16x128xbf16> to vector<16x128xbf16>
    %241 = arith.extf %240 : vector<16x128xbf16> to vector<16x128xf32>
    %242 = arith.mulf %148, %241 : vector<16x128xf32>
    %243 = arith.addf %237, %242 : vector<16x128xf32>
    %c0_90 = arith.constant 0 : index
    %c14 = arith.constant 14 : index
    %244 = arith.index_cast %13 : i32 to index
    %c0_91 = arith.constant 0 : index
    %245 = vector.load %arg2[%c0_90, %c14, %244, %c0_91] : memref<3x16x16x128xbf16, #tpu.memory_space<vmem>>, vector<1x1x16x128xbf16>
    %246 = vector.shape_cast %245 : vector<1x1x16x128xbf16> to vector<16x128xbf16>
    %247 = arith.extf %246 : vector<16x128xbf16> to vector<16x128xf32>
    %248 = arith.mulf %152, %247 : vector<16x128xf32>
    %249 = arith.addf %243, %248 : vector<16x128xf32>
    %c0_92 = arith.constant 0 : index
    %c15 = arith.constant 15 : index
    %250 = arith.index_cast %13 : i32 to index
    %c0_93 = arith.constant 0 : index
    %251 = vector.load %arg2[%c0_92, %c15, %250, %c0_93] : memref<3x16x16x128xbf16, #tpu.memory_space<vmem>>, vector<1x1x16x128xbf16>
    %252 = vector.shape_cast %251 : vector<1x1x16x128xbf16> to vector<16x128xbf16>
    %253 = arith.extf %252 : vector<16x128xbf16> to vector<16x128xf32>
    %254 = arith.mulf %159, %253 : vector<16x128xf32>
    %255 = arith.addf %249, %254 : vector<16x128xf32>
    %cst_94 = arith.constant 5.000000e-01 : f32
    %256 = vector.broadcast %cst_94 : f32 to vector<16x128xf32>
    %257 = arith.addf %255, %256 : vector<16x128xf32>
    %cst_95 = arith.constant 0.000000e+00 : f32
    %258 = vector.broadcast %cst_95 : f32 to vector<16x128xf32>
    %259 = arith.maximumf %257, %258 : vector<16x128xf32>
    %c0_96 = arith.constant 0 : index
    %260 = arith.index_cast %13 : i32 to index
    %c0_97 = arith.constant 0 : index
    %261 = vector.load %arg5[%c0_96, %260, %c0_97] : memref<3x16x128xf32, #tpu.memory_space<vmem>>, vector<1x16x128xf32>
    %262 = vector.shape_cast %261 : vector<1x16x128xf32> to vector<16x128xf32>
    %263 = vector.shape_cast %259 : vector<16x128xf32> to vector<1x16x128xf32>
    tpu.vector_store %arg5[%c0_96, %260, %c0_97], %263 {strides = array<i32>} : memref<3x16x128xf32, #tpu.memory_space<vmem>>, vector<1x16x128xf32>,
    %c1_98 = arith.constant 1 : index
    %c0_99 = arith.constant 0 : index
    %264 = arith.index_cast %13 : i32 to index
    %c0_100 = arith.constant 0 : index
    %265 = vector.load %arg2[%c1_98, %c0_99, %264, %c0_100] : memref<3x16x16x128xbf16, #tpu.memory_space<vmem>>, vector<1x1x16x128xbf16>
    %266 = vector.shape_cast %265 : vector<1x1x16x128xbf16> to vector<16x128xbf16>
    %267 = arith.extf %266 : vector<16x128xbf16> to vector<16x128xf32>
    %cst_101 = arith.constant 0.282094806 : f32
    %268 = vector.broadcast %cst_101 : f32 to vector<16x128xf32>
    %269 = arith.mulf %268, %267 : vector<16x128xf32>
    %c1_102 = arith.constant 1 : index
    %c1_103 = arith.constant 1 : index
    %270 = arith.index_cast %13 : i32 to index
    %c0_104 = arith.constant 0 : index
    %271 = vector.load %arg2[%c1_102, %c1_103, %270, %c0_104] : memref<3x16x16x128xbf16, #tpu.memory_space<vmem>>, vector<1x1x16x128xbf16>
    %272 = vector.shape_cast %271 : vector<1x1x16x128xbf16> to vector<16x128xbf16>
    %273 = arith.extf %272 : vector<16x128xbf16> to vector<16x128xf32>
    %274 = arith.mulf %89, %273 : vector<16x128xf32>
    %275 = arith.addf %269, %274 : vector<16x128xf32>
    %c1_105 = arith.constant 1 : index
    %c2_106 = arith.constant 2 : index
    %276 = arith.index_cast %13 : i32 to index
    %c0_107 = arith.constant 0 : index
    %277 = vector.load %arg2[%c1_105, %c2_106, %276, %c0_107] : memref<3x16x16x128xbf16, #tpu.memory_space<vmem>>, vector<1x1x16x128xbf16>
    %278 = vector.shape_cast %277 : vector<1x1x16x128xbf16> to vector<16x128xbf16>
    %279 = arith.extf %278 : vector<16x128xbf16> to vector<16x128xf32>
    %280 = arith.mulf %91, %279 : vector<16x128xf32>
    %281 = arith.addf %275, %280 : vector<16x128xf32>
    %c1_108 = arith.constant 1 : index
    %c3_109 = arith.constant 3 : index
    %282 = arith.index_cast %13 : i32 to index
    %c0_110 = arith.constant 0 : index
    %283 = vector.load %arg2[%c1_108, %c3_109, %282, %c0_110] : memref<3x16x16x128xbf16, #tpu.memory_space<vmem>>, vector<1x1x16x128xbf16>
    %284 = vector.shape_cast %283 : vector<1x1x16x128xbf16> to vector<16x128xbf16>
    %285 = arith.extf %284 : vector<16x128xbf16> to vector<16x128xf32>
    %286 = arith.mulf %93, %285 : vector<16x128xf32>
    %287 = arith.addf %281, %286 : vector<16x128xf32>
    %c1_111 = arith.constant 1 : index
    %c4_112 = arith.constant 4 : index
    %288 = arith.index_cast %13 : i32 to index
    %c0_113 = arith.constant 0 : index
    %289 = vector.load %arg2[%c1_111, %c4_112, %288, %c0_113] : memref<3x16x16x128xbf16, #tpu.memory_space<vmem>>, vector<1x1x16x128xbf16>
    %290 = vector.shape_cast %289 : vector<1x1x16x128xbf16> to vector<16x128xbf16>
    %291 = arith.extf %290 : vector<16x128xbf16> to vector<16x128xf32>
    %292 = arith.mulf %101, %291 : vector<16x128xf32>
    %293 = arith.addf %287, %292 : vector<16x128xf32>
    %c1_114 = arith.constant 1 : index
    %c5_115 = arith.constant 5 : index
    %294 = arith.index_cast %13 : i32 to index
    %c0_116 = arith.constant 0 : index
    %295 = vector.load %arg2[%c1_114, %c5_115, %294, %c0_116] : memref<3x16x16x128xbf16, #tpu.memory_space<vmem>>, vector<1x1x16x128xbf16>
    %296 = vector.shape_cast %295 : vector<1x1x16x128xbf16> to vector<16x128xbf16>
    %297 = arith.extf %296 : vector<16x128xbf16> to vector<16x128xf32>
    %298 = arith.mulf %103, %297 : vector<16x128xf32>
    %299 = arith.addf %293, %298 : vector<16x128xf32>
    %c1_117 = arith.constant 1 : index
    %c6_118 = arith.constant 6 : index
    %300 = arith.index_cast %13 : i32 to index
    %c0_119 = arith.constant 0 : index
    %301 = vector.load %arg2[%c1_117, %c6_118, %300, %c0_119] : memref<3x16x16x128xbf16, #tpu.memory_space<vmem>>, vector<1x1x16x128xbf16>
    %302 = vector.shape_cast %301 : vector<1x1x16x128xbf16> to vector<16x128xbf16>
    %303 = arith.extf %302 : vector<16x128xbf16> to vector<16x128xf32>
    %304 = arith.mulf %109, %303 : vector<16x128xf32>
    %305 = arith.addf %299, %304 : vector<16x128xf32>
    %c1_120 = arith.constant 1 : index
    %c7_121 = arith.constant 7 : index
    %306 = arith.index_cast %13 : i32 to index
    %c0_122 = arith.constant 0 : index
    %307 = vector.load %arg2[%c1_120, %c7_121, %306, %c0_122] : memref<3x16x16x128xbf16, #tpu.memory_space<vmem>>, vector<1x1x16x128xbf16>
    %308 = vector.shape_cast %307 : vector<1x1x16x128xbf16> to vector<16x128xbf16>
    %309 = arith.extf %308 : vector<16x128xbf16> to vector<16x128xf32>
    %310 = arith.mulf %111, %309 : vector<16x128xf32>
    %311 = arith.addf %305, %310 : vector<16x128xf32>
    %c1_123 = arith.constant 1 : index
    %c8_124 = arith.constant 8 : index
    %312 = arith.index_cast %13 : i32 to index
    %c0_125 = arith.constant 0 : index
    %313 = vector.load %arg2[%c1_123, %c8_124, %312, %c0_125] : memref<3x16x16x128xbf16, #tpu.memory_space<vmem>>, vector<1x1x16x128xbf16>
    %314 = vector.shape_cast %313 : vector<1x1x16x128xbf16> to vector<16x128xbf16>
    %315 = arith.extf %314 : vector<16x128xbf16> to vector<16x128xf32>
    %316 = arith.mulf %114, %315 : vector<16x128xf32>
    %317 = arith.addf %311, %316 : vector<16x128xf32>
    %c1_126 = arith.constant 1 : index
    %c9_127 = arith.constant 9 : index
    %318 = arith.index_cast %13 : i32 to index
    %c0_128 = arith.constant 0 : index
    %319 = vector.load %arg2[%c1_126, %c9_127, %318, %c0_128] : memref<3x16x16x128xbf16, #tpu.memory_space<vmem>>, vector<1x1x16x128xbf16>
    %320 = vector.shape_cast %319 : vector<1x1x16x128xbf16> to vector<16x128xbf16>
    %321 = arith.extf %320 : vector<16x128xbf16> to vector<16x128xf32>
    %322 = arith.mulf %120, %321 : vector<16x128xf32>
    %323 = arith.addf %317, %322 : vector<16x128xf32>
    %c1_129 = arith.constant 1 : index
    %c10_130 = arith.constant 10 : index
    %324 = arith.index_cast %13 : i32 to index
    %c0_131 = arith.constant 0 : index
    %325 = vector.load %arg2[%c1_129, %c10_130, %324, %c0_131] : memref<3x16x16x128xbf16, #tpu.memory_space<vmem>>, vector<1x1x16x128xbf16>
    %326 = vector.shape_cast %325 : vector<1x1x16x128xbf16> to vector<16x128xbf16>
    %327 = arith.extf %326 : vector<16x128xbf16> to vector<16x128xf32>
    %328 = arith.mulf %123, %327 : vector<16x128xf32>
    %329 = arith.addf %323, %328 : vector<16x128xf32>
    %c1_132 = arith.constant 1 : index
    %c11_133 = arith.constant 11 : index
    %330 = arith.index_cast %13 : i32 to index
    %c0_134 = arith.constant 0 : index
    %331 = vector.load %arg2[%c1_132, %c11_133, %330, %c0_134] : memref<3x16x16x128xbf16, #tpu.memory_space<vmem>>, vector<1x1x16x128xbf16>
    %332 = vector.shape_cast %331 : vector<1x1x16x128xbf16> to vector<16x128xbf16>
    %333 = arith.extf %332 : vector<16x128xbf16> to vector<16x128xf32>
    %334 = arith.mulf %130, %333 : vector<16x128xf32>
    %335 = arith.addf %329, %334 : vector<16x128xf32>
    %c1_135 = arith.constant 1 : index
    %c12_136 = arith.constant 12 : index
    %336 = arith.index_cast %13 : i32 to index
    %c0_137 = arith.constant 0 : index
    %337 = vector.load %arg2[%c1_135, %c12_136, %336, %c0_137] : memref<3x16x16x128xbf16, #tpu.memory_space<vmem>>, vector<1x1x16x128xbf16>
    %338 = vector.shape_cast %337 : vector<1x1x16x128xbf16> to vector<16x128xbf16>
    %339 = arith.extf %338 : vector<16x128xbf16> to vector<16x128xf32>
    %340 = arith.mulf %141, %339 : vector<16x128xf32>
    %341 = arith.addf %335, %340 : vector<16x128xf32>
    %c1_138 = arith.constant 1 : index
    %c13_139 = arith.constant 13 : index
    %342 = arith.index_cast %13 : i32 to index
    %c0_140 = arith.constant 0 : index
    %343 = vector.load %arg2[%c1_138, %c13_139, %342, %c0_140] : memref<3x16x16x128xbf16, #tpu.memory_space<vmem>>, vector<1x1x16x128xbf16>
    %344 = vector.shape_cast %343 : vector<1x1x16x128xbf16> to vector<16x128xbf16>
    %345 = arith.extf %344 : vector<16x128xbf16> to vector<16x128xf32>
    %346 = arith.mulf %148, %345 : vector<16x128xf32>
    %347 = arith.addf %341, %346 : vector<16x128xf32>
    %c1_141 = arith.constant 1 : index
    %c14_142 = arith.constant 14 : index
    %348 = arith.index_cast %13 : i32 to index
    %c0_143 = arith.constant 0 : index
    %349 = vector.load %arg2[%c1_141, %c14_142, %348, %c0_143] : memref<3x16x16x128xbf16, #tpu.memory_space<vmem>>, vector<1x1x16x128xbf16>
    %350 = vector.shape_cast %349 : vector<1x1x16x128xbf16> to vector<16x128xbf16>
    %351 = arith.extf %350 : vector<16x128xbf16> to vector<16x128xf32>
    %352 = arith.mulf %152, %351 : vector<16x128xf32>
    %353 = arith.addf %347, %352 : vector<16x128xf32>
    %c1_144 = arith.constant 1 : index
    %c15_145 = arith.constant 15 : index
    %354 = arith.index_cast %13 : i32 to index
    %c0_146 = arith.constant 0 : index
    %355 = vector.load %arg2[%c1_144, %c15_145, %354, %c0_146] : memref<3x16x16x128xbf16, #tpu.memory_space<vmem>>, vector<1x1x16x128xbf16>
    %356 = vector.shape_cast %355 : vector<1x1x16x128xbf16> to vector<16x128xbf16>
    %357 = arith.extf %356 : vector<16x128xbf16> to vector<16x128xf32>
    %358 = arith.mulf %159, %357 : vector<16x128xf32>
    %359 = arith.addf %353, %358 : vector<16x128xf32>
    %cst_147 = arith.constant 5.000000e-01 : f32
    %360 = vector.broadcast %cst_147 : f32 to vector<16x128xf32>
    %361 = arith.addf %359, %360 : vector<16x128xf32>
    %cst_148 = arith.constant 0.000000e+00 : f32
    %362 = vector.broadcast %cst_148 : f32 to vector<16x128xf32>
    %363 = arith.maximumf %361, %362 : vector<16x128xf32>
    %c1_149 = arith.constant 1 : index
    %364 = arith.index_cast %13 : i32 to index
    %c0_150 = arith.constant 0 : index
    %365 = vector.load %arg5[%c1_149, %364, %c0_150] : memref<3x16x128xf32, #tpu.memory_space<vmem>>, vector<1x16x128xf32>
    %366 = vector.shape_cast %365 : vector<1x16x128xf32> to vector<16x128xf32>
    %367 = vector.shape_cast %363 : vector<16x128xf32> to vector<1x16x128xf32>
    tpu.vector_store %arg5[%c1_149, %364, %c0_150], %367 {strides = array<i32>} : memref<3x16x128xf32, #tpu.memory_space<vmem>>, vector<1x16x128xf32>,
    %c2_151 = arith.constant 2 : index
    %c0_152 = arith.constant 0 : index
    %368 = arith.index_cast %13 : i32 to index
    %c0_153 = arith.constant 0 : index
    %369 = vector.load %arg2[%c2_151, %c0_152, %368, %c0_153] : memref<3x16x16x128xbf16, #tpu.memory_space<vmem>>, vector<1x1x16x128xbf16>
    %370 = vector.shape_cast %369 : vector<1x1x16x128xbf16> to vector<16x128xbf16>
    %371 = arith.extf %370 : vector<16x128xbf16> to vector<16x128xf32>
    %cst_154 = arith.constant 0.282094806 : f32
    %372 = vector.broadcast %cst_154 : f32 to vector<16x128xf32>
    %373 = arith.mulf %372, %371 : vector<16x128xf32>
    %c2_155 = arith.constant 2 : index
    %c1_156 = arith.constant 1 : index
    %374 = arith.index_cast %13 : i32 to index
    %c0_157 = arith.constant 0 : index
    %375 = vector.load %arg2[%c2_155, %c1_156, %374, %c0_157] : memref<3x16x16x128xbf16, #tpu.memory_space<vmem>>, vector<1x1x16x128xbf16>
    %376 = vector.shape_cast %375 : vector<1x1x16x128xbf16> to vector<16x128xbf16>
    %377 = arith.extf %376 : vector<16x128xbf16> to vector<16x128xf32>
    %378 = arith.mulf %89, %377 : vector<16x128xf32>
    %379 = arith.addf %373, %378 : vector<16x128xf32>
    %c2_158 = arith.constant 2 : index
    %c2_159 = arith.constant 2 : index
    %380 = arith.index_cast %13 : i32 to index
    %c0_160 = arith.constant 0 : index
    %381 = vector.load %arg2[%c2_158, %c2_159, %380, %c0_160] : memref<3x16x16x128xbf16, #tpu.memory_space<vmem>>, vector<1x1x16x128xbf16>
    %382 = vector.shape_cast %381 : vector<1x1x16x128xbf16> to vector<16x128xbf16>
    %383 = arith.extf %382 : vector<16x128xbf16> to vector<16x128xf32>
    %384 = arith.mulf %91, %383 : vector<16x128xf32>
    %385 = arith.addf %379, %384 : vector<16x128xf32>
    %c2_161 = arith.constant 2 : index
    %c3_162 = arith.constant 3 : index
    %386 = arith.index_cast %13 : i32 to index
    %c0_163 = arith.constant 0 : index
    %387 = vector.load %arg2[%c2_161, %c3_162, %386, %c0_163] : memref<3x16x16x128xbf16, #tpu.memory_space<vmem>>, vector<1x1x16x128xbf16>
    %388 = vector.shape_cast %387 : vector<1x1x16x128xbf16> to vector<16x128xbf16>
    %389 = arith.extf %388 : vector<16x128xbf16> to vector<16x128xf32>
    %390 = arith.mulf %93, %389 : vector<16x128xf32>
    %391 = arith.addf %385, %390 : vector<16x128xf32>
    %c2_164 = arith.constant 2 : index
    %c4_165 = arith.constant 4 : index
    %392 = arith.index_cast %13 : i32 to index
    %c0_166 = arith.constant 0 : index
    %393 = vector.load %arg2[%c2_164, %c4_165, %392, %c0_166] : memref<3x16x16x128xbf16, #tpu.memory_space<vmem>>, vector<1x1x16x128xbf16>
    %394 = vector.shape_cast %393 : vector<1x1x16x128xbf16> to vector<16x128xbf16>
    %395 = arith.extf %394 : vector<16x128xbf16> to vector<16x128xf32>
    %396 = arith.mulf %101, %395 : vector<16x128xf32>
    %397 = arith.addf %391, %396 : vector<16x128xf32>
    %c2_167 = arith.constant 2 : index
    %c5_168 = arith.constant 5 : index
    %398 = arith.index_cast %13 : i32 to index
    %c0_169 = arith.constant 0 : index
    %399 = vector.load %arg2[%c2_167, %c5_168, %398, %c0_169] : memref<3x16x16x128xbf16, #tpu.memory_space<vmem>>, vector<1x1x16x128xbf16>
    %400 = vector.shape_cast %399 : vector<1x1x16x128xbf16> to vector<16x128xbf16>
    %401 = arith.extf %400 : vector<16x128xbf16> to vector<16x128xf32>
    %402 = arith.mulf %103, %401 : vector<16x128xf32>
    %403 = arith.addf %397, %402 : vector<16x128xf32>
    %c2_170 = arith.constant 2 : index
    %c6_171 = arith.constant 6 : index
    %404 = arith.index_cast %13 : i32 to index
    %c0_172 = arith.constant 0 : index
    %405 = vector.load %arg2[%c2_170, %c6_171, %404, %c0_172] : memref<3x16x16x128xbf16, #tpu.memory_space<vmem>>, vector<1x1x16x128xbf16>
    %406 = vector.shape_cast %405 : vector<1x1x16x128xbf16> to vector<16x128xbf16>
    %407 = arith.extf %406 : vector<16x128xbf16> to vector<16x128xf32>
    %408 = arith.mulf %109, %407 : vector<16x128xf32>
    %409 = arith.addf %403, %408 : vector<16x128xf32>
    %c2_173 = arith.constant 2 : index
    %c7_174 = arith.constant 7 : index
    %410 = arith.index_cast %13 : i32 to index
    %c0_175 = arith.constant 0 : index
    %411 = vector.load %arg2[%c2_173, %c7_174, %410, %c0_175] : memref<3x16x16x128xbf16, #tpu.memory_space<vmem>>, vector<1x1x16x128xbf16>
    %412 = vector.shape_cast %411 : vector<1x1x16x128xbf16> to vector<16x128xbf16>
    %413 = arith.extf %412 : vector<16x128xbf16> to vector<16x128xf32>
    %414 = arith.mulf %111, %413 : vector<16x128xf32>
    %415 = arith.addf %409, %414 : vector<16x128xf32>
    %c2_176 = arith.constant 2 : index
    %c8_177 = arith.constant 8 : index
    %416 = arith.index_cast %13 : i32 to index
    %c0_178 = arith.constant 0 : index
    %417 = vector.load %arg2[%c2_176, %c8_177, %416, %c0_178] : memref<3x16x16x128xbf16, #tpu.memory_space<vmem>>, vector<1x1x16x128xbf16>
    %418 = vector.shape_cast %417 : vector<1x1x16x128xbf16> to vector<16x128xbf16>
    %419 = arith.extf %418 : vector<16x128xbf16> to vector<16x128xf32>
    %420 = arith.mulf %114, %419 : vector<16x128xf32>
    %421 = arith.addf %415, %420 : vector<16x128xf32>
    %c2_179 = arith.constant 2 : index
    %c9_180 = arith.constant 9 : index
    %422 = arith.index_cast %13 : i32 to index
    %c0_181 = arith.constant 0 : index
    %423 = vector.load %arg2[%c2_179, %c9_180, %422, %c0_181] : memref<3x16x16x128xbf16, #tpu.memory_space<vmem>>, vector<1x1x16x128xbf16>
    %424 = vector.shape_cast %423 : vector<1x1x16x128xbf16> to vector<16x128xbf16>
    %425 = arith.extf %424 : vector<16x128xbf16> to vector<16x128xf32>
    %426 = arith.mulf %120, %425 : vector<16x128xf32>
    %427 = arith.addf %421, %426 : vector<16x128xf32>
    %c2_182 = arith.constant 2 : index
    %c10_183 = arith.constant 10 : index
    %428 = arith.index_cast %13 : i32 to index
    %c0_184 = arith.constant 0 : index
    %429 = vector.load %arg2[%c2_182, %c10_183, %428, %c0_184] : memref<3x16x16x128xbf16, #tpu.memory_space<vmem>>, vector<1x1x16x128xbf16>
    %430 = vector.shape_cast %429 : vector<1x1x16x128xbf16> to vector<16x128xbf16>
    %431 = arith.extf %430 : vector<16x128xbf16> to vector<16x128xf32>
    %432 = arith.mulf %123, %431 : vector<16x128xf32>
    %433 = arith.addf %427, %432 : vector<16x128xf32>
    %c2_185 = arith.constant 2 : index
    %c11_186 = arith.constant 11 : index
    %434 = arith.index_cast %13 : i32 to index
    %c0_187 = arith.constant 0 : index
    %435 = vector.load %arg2[%c2_185, %c11_186, %434, %c0_187] : memref<3x16x16x128xbf16, #tpu.memory_space<vmem>>, vector<1x1x16x128xbf16>
    %436 = vector.shape_cast %435 : vector<1x1x16x128xbf16> to vector<16x128xbf16>
    %437 = arith.extf %436 : vector<16x128xbf16> to vector<16x128xf32>
    %438 = arith.mulf %130, %437 : vector<16x128xf32>
    %439 = arith.addf %433, %438 : vector<16x128xf32>
    %c2_188 = arith.constant 2 : index
    %c12_189 = arith.constant 12 : index
    %440 = arith.index_cast %13 : i32 to index
    %c0_190 = arith.constant 0 : index
    %441 = vector.load %arg2[%c2_188, %c12_189, %440, %c0_190] : memref<3x16x16x128xbf16, #tpu.memory_space<vmem>>, vector<1x1x16x128xbf16>
    %442 = vector.shape_cast %441 : vector<1x1x16x128xbf16> to vector<16x128xbf16>
    %443 = arith.extf %442 : vector<16x128xbf16> to vector<16x128xf32>
    %444 = arith.mulf %141, %443 : vector<16x128xf32>
    %445 = arith.addf %439, %444 : vector<16x128xf32>
    %c2_191 = arith.constant 2 : index
    %c13_192 = arith.constant 13 : index
    %446 = arith.index_cast %13 : i32 to index
    %c0_193 = arith.constant 0 : index
    %447 = vector.load %arg2[%c2_191, %c13_192, %446, %c0_193] : memref<3x16x16x128xbf16, #tpu.memory_space<vmem>>, vector<1x1x16x128xbf16>
    %448 = vector.shape_cast %447 : vector<1x1x16x128xbf16> to vector<16x128xbf16>
    %449 = arith.extf %448 : vector<16x128xbf16> to vector<16x128xf32>
    %450 = arith.mulf %148, %449 : vector<16x128xf32>
    %451 = arith.addf %445, %450 : vector<16x128xf32>
    %c2_194 = arith.constant 2 : index
    %c14_195 = arith.constant 14 : index
    %452 = arith.index_cast %13 : i32 to index
    %c0_196 = arith.constant 0 : index
    %453 = vector.load %arg2[%c2_194, %c14_195, %452, %c0_196] : memref<3x16x16x128xbf16, #tpu.memory_space<vmem>>, vector<1x1x16x128xbf16>
    %454 = vector.shape_cast %453 : vector<1x1x16x128xbf16> to vector<16x128xbf16>
    %455 = arith.extf %454 : vector<16x128xbf16> to vector<16x128xf32>
    %456 = arith.mulf %152, %455 : vector<16x128xf32>
    %457 = arith.addf %451, %456 : vector<16x128xf32>
    %c2_197 = arith.constant 2 : index
    %c15_198 = arith.constant 15 : index
    %458 = arith.index_cast %13 : i32 to index
    %c0_199 = arith.constant 0 : index
    %459 = vector.load %arg2[%c2_197, %c15_198, %458, %c0_199] : memref<3x16x16x128xbf16, #tpu.memory_space<vmem>>, vector<1x1x16x128xbf16>
    %460 = vector.shape_cast %459 : vector<1x1x16x128xbf16> to vector<16x128xbf16>
    %461 = arith.extf %460 : vector<16x128xbf16> to vector<16x128xf32>
    %462 = arith.mulf %159, %461 : vector<16x128xf32>
    %463 = arith.addf %457, %462 : vector<16x128xf32>
    %cst_200 = arith.constant 5.000000e-01 : f32
    %464 = vector.broadcast %cst_200 : f32 to vector<16x128xf32>
    %465 = arith.addf %463, %464 : vector<16x128xf32>
    %cst_201 = arith.constant 0.000000e+00 : f32
    %466 = vector.broadcast %cst_201 : f32 to vector<16x128xf32>
    %467 = arith.maximumf %465, %466 : vector<16x128xf32>
    %c2_202 = arith.constant 2 : index
    %468 = arith.index_cast %13 : i32 to index
    %c0_203 = arith.constant 0 : index
    %469 = vector.load %arg5[%c2_202, %468, %c0_203] : memref<3x16x128xf32, #tpu.memory_space<vmem>>, vector<1x16x128xf32>
    %470 = vector.shape_cast %469 : vector<1x16x128xf32> to vector<16x128xf32>
    %471 = vector.shape_cast %467 : vector<16x128xf32> to vector<1x16x128xf32>
    tpu.vector_store %arg5[%c2_202, %468, %c0_203], %471 {strides = array<i32>} : memref<3x16x128xf32, #tpu.memory_space<vmem>>, vector<1x16x128xf32>,
    %c1_i32_204 = arith.constant 1 : i32
    return
  }
  func.func @transform_0(%arg0: i32, %arg1: memref<3xf32, #tpu.memory_space<smem>>) -> (i32, i32, i32, i32) {
    %c0_i32 = arith.constant 0 : i32
    %c0_i32_0 = arith.constant 0 : i32
    %c0_i32_1 = arith.constant 0 : i32
    %c0_i32_2 = arith.constant 0 : i32
    return %c0_i32, %c0_i32_0, %arg0, %c0_i32_1 : i32, i32, i32, i32
  }
  func.func @transform_1(%arg0: i32, %arg1: memref<3xf32, #tpu.memory_space<smem>>) -> (i32, i32, i32) {
    %c0_i32 = arith.constant 0 : i32
    %c0_i32_0 = arith.constant 0 : i32
    %c0_i32_1 = arith.constant 0 : i32
    return %c0_i32, %arg0, %c0_i32_0 : i32, i32, i32
  }
  func.func @transform_2(%arg0: i32, %arg1: memref<3xf32, #tpu.memory_space<smem>>) -> (i32, i32, i32, i32) {
    %c0_i32 = arith.constant 0 : i32
    %c0_i32_0 = arith.constant 0 : i32
    %c0_i32_1 = arith.constant 0 : i32
    %c0_i32_2 = arith.constant 0 : i32
    return %c0_i32, %c0_i32_0, %arg0, %c0_i32_1 : i32, i32, i32, i32
  }
  func.func @transform_3(%arg0: i32, %arg1: memref<3xf32, #tpu.memory_space<smem>>) -> (i32, i32, i32) {
    %c0_i32 = arith.constant 0 : i32
    %c0_i32_0 = arith.constant 0 : i32
    %c0_i32_1 = arith.constant 0 : i32
    return %c0_i32, %arg0, %c0_i32_0 : i32, i32, i32
  }
}

</mosaic_0001>

<bundles_post_ra>
// kernel: tpu_custom_call.1
= control target key start
LH: loop header
LB: loop body
LE: loop exit
PB: predicated region body
PF: predicated region fallthrough
CT: control target
= control target key end

     0   :  { %s1278_s18 = smov [#allocation3]   ;;  %s1683_s0 = inlined_call_operand.hbm [shape: f32[3], index: 0, kind: input, shape index: {}]   ;;  %s1684_s1 = inlined_call_operand.hbm [shape: bf16[3,16,16,128], index: 1, kind: input, shape index: {}]   ;;  %s1685_s2 = inlined_call_operand.hbm [shape: f32[3,16,128], index: 2, kind: input, shape index: {}]   ;;  %s1686_s3 = inlined_call_operand.hbm [shape: bf16[3,3,16,128], index: 3, kind: input, shape index: {}]   ;;  %s1687_s4 = inlined_call_operand.hbm [shape: f32[3,16,128], index: 4, kind: output, shape index: {}]  }
   0x1   :  { %s10_s17 = sshll.u32 %s1683_s0, 4  ;;  %s11_s17 = int_to_ptr.hbm [resolvable:$true] %s10_s17 }
   0x2   :  { %13 = dma.hbm_to_smem %s11_s17, 16, %s1278_s18, [#allocation2] }
   0x3   :  { %1270 = dma.done.wait [#allocation2], 16 }
   0x4   :  { %1271 = vsyncadd [#allocation2], 4294967280 }
   0x5   :  { %16 = sfence }
   0x6   :  { %17 = vsyncpa [#allocation5], 0 }
   0x7   :  { %18 = vsyncpa [#allocation8], 0  ;;  %s37_s21 = sshll.u32 %s1685_s2, 4  ;;  %s38_s21 = int_to_ptr.hbm [resolvable:$true] %s37_s21 }
   0x8   :  { %19 = vsyncpa [#allocation6], 0  ;;  %s1279_s22 = smov [#allocation7]   ;;  %s24_s0 = sshll.u32 %s1684_s1, 4  ;;  %s25_s0 = int_to_ptr.hbm [resolvable:$true] %s24_s0 }
   0x9   :  { %s39_s23 = sshll.u32 %s1279_s22, 4  ;;  %s1280_s26 = smov 128   ;;  %s40_s23 = int_to_ptr.vmem [resolvable:$true] %s39_s23 }
   0xa   :  { %s1281_s27 = smov 8   ;;  %s1282_s28 = smov [#allocation4]  }
   0xb   :  { %45 = dma.hbm_to_vmem [thread:$0]  %s38_s21, 768, %s40_s23, [#allocation8], %s1280_s26, %s1280_s26, %s1281_s27  }
   0xc   :  { %s26_s29 = sshll.u32 %s1282_s28, 4  ;;  %s1283_s2 = smov 64   ;;  %s27_s29 = int_to_ptr.vmem [resolvable:$true] %s26_s29 }
   0xd   :  { %s1284_s30 = smov 4   ;;  %s50_s7 = sshll.u32 %s1686_s3, 4  ;;  %s51_s7 = int_to_ptr.hbm [resolvable:$true] %s50_s7 }
   0xe   :  { %32 = dma.hbm_to_vmem [thread:$0]  %s25_s0, 6144, %s27_s29, [#allocation5], %s1283_s2, %s1283_s2, %s1284_s30  }
   0xf   :  { %s1285_s8 = smov [#allocation9]  }
  0x10   :  { %s52_s1 = sshll.u32 %s1285_s8, 4  ;;  %s53_s1 = int_to_ptr.vmem [resolvable:$true] %s52_s1 }
  0x11   :  { %58 = dma.hbm_to_vmem [thread:$0]  %s51_s7, 1152, %s53_s1, [#allocation8], %s1283_s2, %s1283_s2, %s1284_s30  }
  0x12   :  { %1272 = dma.done.wait [#allocation5], 6144  }
  0x13   :  { %1273 = vsyncadd [#allocation5], 4294961152 }
  0x14   :  { %1274 = dma.done.wait [#allocation8], 1920  }
  0x15   :  { %1275 = vsyncadd [#allocation8], 4294965376  ;;  %s71_s9 = sld [smem:[#allocation3]]  ;;  %v77_v1 = vld [vmem:[#allocation7] sm:$0xff]  ;;  %v78_v2 = vld [vmem:[#allocation7 + $0x8] sm:$0xff]  ;;  %s1286_s3 = smov [#allocation10]  }
  0x16   :  { %s919_s10 = sld [smem:[#allocation3 + $0x1]]  ;;  %v83_v3 = vld [vmem:[#allocation7 + $0x10] sm:$0xff]  ;;  %v84_v7 = vld [vmem:[#allocation7 + $0x18] sm:$0xff]  ;;  %v89_v8 = vld [vmem:[#allocation7 + $0x20] sm:$0xff]  ;;  %s844_s12 = sshll.u32 %s1286_s3, 4  ;;  %s845_s12 = int_to_ptr.vmem [resolvable:$true] %s844_s12 }
  0x17   :  { %s920_s11 = sld [smem:[#allocation3 + $0x2]]  ;;  %v90_v9 = vld [vmem:[#allocation7 + $0x28] sm:$0xff]  ;;  %v1351_v27 = vld [vmem:[#allocation9] sm:$0xff]   ;;  %v1353_v28 = vld [vmem:[#allocation9 + $0x8] sm:$0xff]   ;;  %s846_s15 = sshll.u32 %s1687_s4, 4  ;;  %s847_s15 = int_to_ptr.hbm [resolvable:$true] %s846_s15 }
  0x18   :  { %v1355_v29 = vld [vmem:[#allocation9 + $0x10] sm:$0xff]   ;;  %v1357_v30 = vld [vmem:[#allocation9 + $0x18] sm:$0xff]   ;;  %v923_v31 = vunpack.c.l.bf16 %v1351_v27  ;;  %v1360_v32 = vld [vmem:[#allocation9 + $0x20] sm:$0xff]   ;;  %v924_v35 = vunpack.c.h.bf16 %v1351_v27  ;;  %v927_v36 = vunpack.c.l.bf16 %v1353_v28  ;;  %v928_v37 = vunpack.c.h.bf16 %v1353_v28 }
  0x19   :  { %v1362_v33 = vld [vmem:[#allocation9 + $0x28] sm:$0xff]   ;;  %v931_v38 = vunpack.c.l.bf16 %v1355_v29  ;;  %v1368_v39 = vld [vmem:[#allocation9 + $0x30] sm:$0xff]   ;;  %v932_v42 = vunpack.c.h.bf16 %v1355_v29  ;;  %v935_v43 = vunpack.c.l.bf16 %v1357_v30  ;;  %v936_v44 = vunpack.c.h.bf16 %v1357_v30  ;;  %v1373_v45 = vld [vmem:[#allocation9 + $0x38] sm:$0xff]  }
  0x1a   :  { %v958_v46 = vld [vmem:[#allocation4] sm:$0xff]   ;;  %v939_v48 = vunpack.c.l.bf16 %v1360_v32  ;;  %v940_v49 = vunpack.c.h.bf16 %v1360_v32  ;;  %v943_v50 = vunpack.c.l.bf16 %v1362_v33  ;;  %v944_v52 = vunpack.c.h.bf16 %v1362_v33  ;;  %v1381_v55 = vld [vmem:[#allocation9 + $0x40] sm:$0xff]   ;;  %v1385_v60 = vld [vmem:[#allocation4 + $0x8] sm:$0xff]  }
  0x1b   :  { %v72_v0 = vstv %s71_s9  ;;  %v947_v53 = vunpack.c.l.bf16 %v1368_v39  ;;  %v948_v54 = vunpack.c.h.bf16 %v1368_v39  ;;  %v951_v57 = vunpack.c.l.bf16 %v1373_v45 }
  0x1c   :  { %v74_v4 = vstv %s919_s10  ;;  %v1327_v5 = vsub.f32 %v77_v1, %v72_v0  ;;  %v1329_v6 = vsub.f32 %v78_v2, %v72_v0  ;;  %v952_v58 = vunpack.c.h.bf16 %v1373_v45 }
  0x1d   :  { %v76_v10 = vstv %s920_s11  ;;  %v1331_v11 = vsub.f32 %v83_v3, %v74_v4  ;;  %v1333_v12 = vsub.f32 %v84_v7, %v74_v4  ;;  %v959_v59 = vunpack.c.l.bf16 %v958_v46  ;;  %v1022_v7 = vld [vmem:[#allocation4 + $0x80] sm:$0xff]  }
  0x1e   :  { %v1335_v13 = vsub.f32 %v89_v8, %v76_v10  ;;  %v1337_v14 = vsub.f32 %v90_v9, %v76_v10  ;;  %v93_v15 = vmul.f32 %v1327_v5, %v1327_v5  ;;  %v94_v16 = vmul.f32 %v1329_v6, %v1329_v6  ;;  %v1391_v8 = vld [vmem:[#allocation4 + $0x88] sm:$0xff]  }
  0x1f   :  { %v95_v17 = vmul.f32 %v1331_v11, %v1331_v11  ;;  %v96_v18 = vmul.f32 %v1333_v12, %v1333_v12  ;;  %v960_v62 = vunpack.c.h.bf16 %v958_v46  ;;  %v955_v0 = vunpack.c.l.bf16 %v1381_v55 }
  0x20   :  { %v99_v19 = vmul.f32 %v1335_v13, %v1335_v13  ;;  %v100_v20 = vmul.f32 %v1337_v14, %v1337_v14  ;;  %v956_v2 = vunpack.c.h.bf16 %v1381_v55 }
  0x21   :  { %v97_v21 = vadd.f32 %v95_v17, %v93_v15  ;;  %v98_v22 = vadd.f32 %v96_v18, %v94_v16  ;;  %v1397_v15 = vmul.f32 0.2820948, %v959_v59  ;;  %v1399_v16 = vld [vmem:[#allocation4 + $0x10] sm:$0xff]   ;;  %v1023_v17 = vunpack.c.l.bf16 %v1022_v7 }
  0x22   :  { %v1024_v18 = vunpack.c.h.bf16 %v1022_v7 }
  0x23   :  { %v101_v23 = vadd.f32 %v99_v19, %v97_v21  ;;  %v102_v24 = vadd.f32 %v100_v20, %v98_v22  ;;  %v1403_v20 = vmul.f32 0.2820948, %v960_v62 }
  0x24   :  { %v1417_v55 = vmul.f32 0.2820948, %v1024_v18 }
  0x25   :  { %v103_v25 = vadd.f32 1e-24, %v101_v23  ;;  %v104_v26 = vadd.f32 1e-24, %v102_v24 }
  0x26   :  { %1694 = vst [vmem:[#allocation15_spill] sm:$0xff] %v1417_v55 }
  0x27   :  { %1158 = vrsqrt.f32 %v103_v25  ;;  %vm111_vm0 = vweird.f32 %v103_v25  ;;  %vm121_vm2 = vweird.f32 %v104_v26 }
  0x28   :  { %1160 = vrsqrt.f32 %v104_v26 }
  0x2d   :  { %v1159_v34 = vpop.eup %1158 }
  0x2e   :  { %v1161_v40 = vpop.eup %1160  ;;  %v106_v41 = vmul.f32 %v1159_v34, %v103_v25  ;;  %vm112_vm1 = vweird.f32 %v1159_v34  ;;  %v1408_v25 = vld [vmem:[#allocation4 + $0x18] sm:$0xff]  }
  0x2f   :  { %v116_v47 = vmul.f32 %v1161_v40, %v104_v26  ;;  %vm122_vm3 = vweird.f32 %v1161_v40  ;;  %vm1393_vm4 = vmor %vm111_vm0, %vm112_vm1 }
  0x30   :  { %v107_v51 = vmul.f32 %v1159_v34, %v106_v41  ;;  %vm123_vm5 = vmor %vm121_vm2, %vm122_vm3  ;;  %v1410_v41 = vmul.f32 0.2820948, %v1023_v17 }
  0x31   :  { %v117_v56 = vmul.f32 %v1161_v40, %v116_v47 }
  0x32   :  { %v108_v61 = vmul.f32 0.5, %v107_v51 }
  0x33   :  { %v118_v63 = vmul.f32 0.5, %v117_v56 }
  0x34   :  { %v109_v1 = vsub.f32 1.5, %v108_v61 }
  0x35   :  { %v119_v10 = vsub.f32 1.5, %v118_v63  ;;  %v1422_v63 = vld [vmem:[#allocation4 + $0x20] sm:$0xff]  }
  0x36   :  { %v110_v19 = vmul.f32 %v1159_v34, %v109_v1 }
  0x37   :  { %v120_v23 = vmul.f32 %v1161_v40, %v119_v10 }
  0x38   :  { %v114_v47 = vsel %vm1393_vm4, %v1159_v34, %v110_v19 }
  0x39   :  { %v124_v56 = vsel %vm123_vm5, %v1161_v40, %v120_v23  ;;  %v125_v59 = vmul.f32 %v114_v47, %v1327_v5  ;;  %v127_v61 = vmul.f32 %v114_v47, %v1331_v11  ;;  %v129_v62 = vmul.f32 %v114_v47, %v1335_v13 }
  0x3a   :  { %v126_v1 = vmul.f32 %v124_v56, %v1329_v6  ;;  %v128_v7 = vmul.f32 %v124_v56, %v1333_v12  ;;  %v130_v34 = vmul.f32 %v124_v56, %v1337_v14 }
  0x3b   :  { %v191_v10 = vmul.f32 %v923_v31, %v125_v59  ;;  %v193_v5 = vmul.f32 %v927_v36, %v127_v61  ;;  %v197_v11 = vmul.f32 %v931_v38, %v129_v62  ;;  %v201_v13 = vmul.f32 %v935_v43, %v125_v59 }
  0x3c   :  { %v192_v6 = vmul.f32 %v924_v35, %v126_v1  ;;  %v194_v12 = vmul.f32 %v928_v37, %v128_v7  ;;  %v198_v14 = vmul.f32 %v932_v42, %v130_v34  ;;  %v202_v31 = vmul.f32 %v936_v44, %v126_v1 }
  0x3d   :  { %v195_v40 = vadd.f32 %v193_v5, %v191_v10  ;;  %v203_v36 = vmul.f32 %v939_v48, %v127_v61  ;;  %v204_v38 = vmul.f32 %v940_v49, %v128_v7  ;;  %v207_v27 = vmul.f32 %v943_v50, %v129_v62 }
  0x3e   :  { %v196_v35 = vadd.f32 %v194_v12, %v192_v6  ;;  %v208_v28 = vmul.f32 %v944_v52, %v130_v34  ;;  %v211_v29 = vmul.f32 %v947_v53, %v125_v59  ;;  %v212_v30 = vmul.f32 %v948_v54, %v126_v1 }
  0x3f   :  { %v1456_v37 = vadd.f32 %v197_v11, %v195_v40  ;;  %v205_v42 = vadd.f32 %v203_v36, %v201_v13  ;;  %v206_v43 = vadd.f32 %v204_v38, %v202_v31  ;;  %v213_v32 = vmul.f32 %v951_v57, %v127_v61 }
  0x40   :  { %v1460_v44 = vadd.f32 %v198_v14, %v196_v35  ;;  %v214_v48 = vmul.f32 %v952_v58, %v128_v7  ;;  %v217_v33 = vmul.f32 %v955_v0, %v129_v62  ;;  %v218_v49 = vmul.f32 %v956_v2, %v130_v34 }
  0x41   :  { %v209_v50 = vadd.f32 %v207_v27, %v205_v42  ;;  %v210_v52 = vadd.f32 %v208_v28, %v206_v43  ;;  %v215_v53 = vadd.f32 %v213_v32, %v211_v29  ;;  %v1465_v39 = vmul.f32 -0.48860252, %v1456_v37 }
  0x42   :  { %v216_v54 = vadd.f32 %v214_v48, %v212_v30  ;;  %v1468_v17 = vmul.f32 -0.48860252, %v1460_v44  ;;  %v227_v57 = vmul.f32 %v1456_v37, %v1456_v37  ;;  %v1474_v18 = vmul.f32 %v1460_v44, %v1460_v44 }
  0x43   :  { %v219_v45 = vadd.f32 %v217_v33, %v215_v53  ;;  %v1476_v58 = vmul.f32 -0.48860252, %v209_v50  ;;  %v1478_v0 = vmul.f32 -0.48860252, %v210_v52  ;;  %v229_v2 = vmul.f32 %v209_v50, %v209_v50 }
  0x44   :  { %v220_v19 = vadd.f32 %v218_v49, %v216_v54  ;;  %v230_v23 = vmul.f32 %v210_v52, %v210_v52  ;;  %v233_v47 = vmul.f32 %v209_v50, %v1456_v37  ;;  %v234_v56 = vmul.f32 %v210_v52, %v1460_v44 }
  0x45   :  { %1695 = vst [vmem:[#allocation16_spill] sm:$0xff] %v1476_v58  ;;  %v1482_v59 = vmul.f32 0.48860252, %v219_v45  ;;  %v1484_v61 = vmul.f32 %v219_v45, %v219_v45  ;;  %v235_v62 = vmul.f32 %v219_v45, %v209_v50  ;;  %v237_v1 = vmul.f32 %v219_v45, %v1456_v37 }
  0x46   :  { %1696 = vst [vmem:[#allocation17_spill] sm:$0xff] %v1478_v0  ;;  %v1487_v7 = vmul.f32 0.48860252, %v220_v19  ;;  %v1489_v34 = vmul.f32 %v220_v19, %v220_v19  ;;  %v236_v10 = vmul.f32 %v220_v19, %v210_v52  ;;  %v238_v5 = vmul.f32 %v220_v19, %v1460_v44 }
  0x47   :  { %v1492_v11 = vmul.f32 1.0925485, %v233_v47  ;;  %v1494_v13 = vmul.f32 1.0925485, %v234_v56  ;;  %v1496_v6 = vmul.f32 -1.0925485, %v235_v62  ;;  %v1498_v12 = vsub.f32 %v227_v57, %v229_v2 }
  0x48   :  { %v1500_v14 = vmul.f32 -1.0925485, %v236_v10  ;;  %v243_v31 = vmul.f32 2.0, %v1484_v61  ;;  %v244_v40 = vmul.f32 2.0, %v1489_v34  ;;  %v1504_v36 = vmul.f32 -1.0925485, %v237_v1 }
  0x49   :  { %v1506_v38 = vmul.f32 -1.0925485, %v238_v5  ;;  %v1509_v27 = vsub.f32 %v1474_v18, %v230_v23  ;;  %v1512_v35 = vmul.f32 0.54627424, %v1498_v12  ;;  %v257_v28 = vmul.f32 -0.5900436, %v209_v50 }
  0x4a   :  { %v245_v29 = vsub.f32 %v243_v31, %v227_v57  ;;  %v246_v30 = vsub.f32 %v244_v40, %v1474_v18  ;;  %v258_v42 = vmul.f32 -0.5900436, %v210_v52  ;;  %v259_v43 = vmul.f32 3.0, %v227_v57 }
  0x4b   :  { %v1516_v32 = vmul.f32 0.54627424, %v1509_v27  ;;  %v260_v48 = vmul.f32 3.0, %v1474_v18  ;;  %v265_v33 = vmul.f32 2.8906114, %v233_v47  ;;  %v271_v49 = vmul.f32 4.0, %v1484_v61 }
  0x4c   :  { %v247_v53 = vsub.f32 %v245_v29, %v229_v2  ;;  %v248_v54 = vsub.f32 %v246_v30, %v230_v23  ;;  %v261_v62 = vsub.f32 %v259_v43, %v229_v2  ;;  %v266_v1 = vmul.f32 2.8906114, %v234_v56 }
  0x4d   :  { %v262_v10 = vsub.f32 %v260_v48, %v230_v23  ;;  %v1520_v5 = vmul.f32 %v265_v33, %v219_v45  ;;  %v269_v46 = vmul.f32 -0.4570458, %v209_v50  ;;  %v270_v22 = vmul.f32 -0.4570458, %v210_v52 }
  0x4e   :  { %v1522_v9 = vmul.f32 0.31539157, %v247_v53  ;;  %v1524_v51 = vmul.f32 0.31539157, %v248_v54  ;;  %v1526_v26 = vmul.f32 %v261_v62, %v257_v28  ;;  %v1528_v24 = vmul.f32 %v266_v1, %v220_v19 }
  0x4f   :  { %v1530_v47 = vmul.f32 %v262_v10, %v258_v42  ;;  %v272_v29 = vmul.f32 4.0, %v1489_v34  ;;  %v273_v30 = vsub.f32 %v271_v49, %v227_v57  ;;  %v279_v21 = vmul.f32 0.37317634, %v219_v45 }
  0x50   :  { %v280_v56 = vmul.f32 0.37317634, %v220_v19  ;;  %v281_v4 = vsub.f32 %v243_v31, %v259_v43  ;;  %v282_v33 = vsub.f32 %v244_v40, %v260_v48  ;;  %v283_v3 = vmul.f32 3.0, %v229_v2 }
  0x51   :  { %v274_v50 = vsub.f32 %v272_v29, %v1474_v18  ;;  %v275_v52 = vsub.f32 %v273_v30, %v229_v2  ;;  %v284_v53 = vmul.f32 3.0, %v230_v23  ;;  %v289_v54 = vmul.f32 -0.4570458, %v1456_v37 }
  0x52   :  { %v285_v28 = vsub.f32 %v281_v4, %v283_v3  ;;  %v290_v62 = vmul.f32 -0.4570458, %v1460_v44  ;;  %v293_v1 = vmul.f32 1.4453057, %v219_v45  ;;  %v294_v42 = vmul.f32 1.4453057, %v220_v19 }
  0x53   :  { %v276_v10 = vsub.f32 %v274_v50, %v230_v23  ;;  %v1536_v55 = vmul.f32 %v275_v52, %v269_v46  ;;  %v286_v57 = vsub.f32 %v282_v33, %v284_v53  ;;  %v1538_v49 = vmul.f32 %v289_v54, %v275_v52 }
  0x54   :  { %v1540_v31 = vmul.f32 %v285_v28, %v279_v21  ;;  %v1543_v40 = vmul.f32 %v293_v1, %v1498_v12  ;;  %v1546_v18 = vmul.f32 %v294_v42, %v1509_v27  ;;  %v297_v3 = vmul.f32 -0.5900436, %v1456_v37  ;;  %v982_v28 = vld [vmem:[#allocation4 + $0x30] sm:$0xff]  }
  0x55   :  { %v1549_v4 = vmul.f32 %v276_v10, %v270_v22  ;;  %v1551_v45 = vmul.f32 %v286_v57, %v280_v56  ;;  %v1553_v2 = vmul.f32 %v290_v62, %v276_v10  ;;  %v298_v46 = vmul.f32 -0.5900436, %v1460_v44  ;;  %v978_v22 = vld [vmem:[#allocation4 + $0x28] sm:$0xff]   ;;  %v986_v57 = vld [vmem:[#allocation4 + $0x38] sm:$0xff]  }
  0x56   :  { %v299_v19 = vmul.f32 3.0, %v1484_v61  ;;  %v300_v21 = vmul.f32 3.0, %v1489_v34  ;;  %v1697_v23 = vunpack.c.l.bf16 %v1385_v60  ;;  %v1698_v48 = vunpack.c.h.bf16 %v1385_v60 }
  0x57   :  { %v1699_v29 = vunpack.c.l.bf16 %v1399_v16  ;;  %v1700_v44 = vunpack.c.h.bf16 %v1399_v16  ;;  %v1701_v61 = vunpack.c.l.bf16 %v1408_v25  ;;  %v1702_v33 = vunpack.c.h.bf16 %v1408_v25 }
  0x58   :  { %v317_v43 = vmul.f32 %v1697_v23, %v1476_v58  ;;  %v318_v37 = vmul.f32 %v1698_v48, %v1478_v0  ;;  %v301_v60 = vsub.f32 %v1498_v12, %v299_v19  ;;  %v302_v52 = vsub.f32 %v1509_v27, %v300_v21  ;;  %v990_v19 = vld [vmem:[#allocation4 + $0x40] sm:$0xff]  }
  0x59   :  { %v327_v30 = vmul.f32 %v1699_v29, %v1482_v59  ;;  %v328_v56 = vmul.f32 %v1700_v44, %v1487_v7  ;;  %v337_v34 = vmul.f32 %v1701_v61, %v1465_v39  ;;  %v338_v50 = vmul.f32 %v1702_v33, %v1468_v17 }
  0x5a   :  { %v319_v53 = vadd.f32 %v317_v43, %v1397_v15  ;;  %v320_v54 = vadd.f32 %v318_v37, %v1403_v20  ;;  %v976_v16 = vunpack.c.h.bf16 %v1422_v63  ;;  %v1703_v62 = vunpack.c.l.bf16 %v1422_v63 }
  0x5b   :  { %v979_v42 = vunpack.c.l.bf16 %v978_v22  ;;  %v980_v10 = vunpack.c.h.bf16 %v978_v22  ;;  %v1584_v25 = vmul.f32 %v301_v60, %v297_v3  ;;  %v1586_v23 = vmul.f32 %v302_v52, %v298_v46  ;;  %v994_v22 = vld [vmem:[#allocation4 + $0x48] sm:$0xff]  }
  0x5c   :  { %v348_v1 = vmul.f32 %v1703_v62, %v1492_v11  ;;  %v329_v12 = vadd.f32 %v327_v30, %v319_v53  ;;  %v330_v27 = vadd.f32 %v328_v56, %v320_v54  ;;  %v349_v15 = vmul.f32 %v976_v16, %v1494_v13  ;;  %v998_v30 = vld [vmem:[#allocation4 + $0x50] sm:$0xff]   ;;  %v1002_v53 = vld [vmem:[#allocation4 + $0x58] sm:$0xff]  }
  0x5d   :  { %1704 = vst [vmem:[#allocation18_spill] sm:$0xff] %v1584_v25  ;;  %v359_v20 = vmul.f32 %v979_v42, %v1496_v6  ;;  %v360_v21 = vmul.f32 %v980_v10, %v1500_v14  ;;  %v983_v43 = vunpack.c.l.bf16 %v982_v28  ;;  %v984_v37 = vunpack.c.h.bf16 %v982_v28 }
  0x5e   :  { %v339_v48 = vadd.f32 %v337_v34, %v329_v12  ;;  %v340_v63 = vadd.f32 %v338_v50, %v330_v27  ;;  %v987_v29 = vunpack.c.l.bf16 %v986_v57  ;;  %v988_v44 = vunpack.c.h.bf16 %v986_v57  ;;  %v1006_v57 = vld [vmem:[#allocation4 + $0x60] sm:$0xff]  }
  0x5f   :  { %v369_v3 = vmul.f32 %v983_v43, %v1522_v9  ;;  %v991_v46 = vunpack.c.l.bf16 %v990_v19  ;;  %v992_v61 = vunpack.c.h.bf16 %v990_v19  ;;  %v370_v60 = vmul.f32 %v984_v37, %v1524_v51 }
  0x60   :  { %v350_v56 = vadd.f32 %v348_v1, %v339_v48  ;;  %v351_v33 = vadd.f32 %v349_v15, %v340_v63  ;;  %v380_v52 = vmul.f32 %v987_v29, %v1504_v36  ;;  %v381_v54 = vmul.f32 %v988_v44, %v1506_v38  ;;  %v1010_v15 = vld [vmem:[#allocation4 + $0x68] sm:$0xff]   ;;  %v1014_v29 = vld [vmem:[#allocation4 + $0x70] sm:$0xff]  }
  0x61   :  { %v391_v34 = vmul.f32 %v991_v46, %v1512_v35  ;;  %v392_v50 = vmul.f32 %v992_v61, %v1516_v32  ;;  %v995_v28 = vunpack.c.l.bf16 %v994_v22  ;;  %v996_v42 = vunpack.c.h.bf16 %v994_v22 }
  0x62   :  { %v361_v16 = vadd.f32 %v359_v20, %v350_v56  ;;  %v362_v62 = vadd.f32 %v360_v21, %v351_v33  ;;  %v999_v10 = vunpack.c.l.bf16 %v998_v30  ;;  %v1000_v12 = vunpack.c.h.bf16 %v998_v30  ;;  %v1018_v33 = vld [vmem:[#allocation4 + $0x78] sm:$0xff]  }
  0x63   :  { %v402_v1 = vmul.f32 %v995_v28, %v1526_v26  ;;  %v1003_v27 = vunpack.c.l.bf16 %v1002_v53  ;;  %v1004_v19 = vunpack.c.h.bf16 %v1002_v53  ;;  %v403_v63 = vmul.f32 %v996_v42, %v1530_v47 }
  0x64   :  { %v371_v43 = vadd.f32 %v369_v3, %v361_v16  ;;  %v372_v48 = vadd.f32 %v370_v60, %v362_v62  ;;  %v413_v37 = vmul.f32 %v999_v10, %v1520_v5  ;;  %v414_v44 = vmul.f32 %v1000_v12, %v1528_v24  ;;  %v1030_v12 = vld [vmem:[#allocation4 + $0x90] sm:$0xff]  }
  0x65   :  { %v424_v20 = vmul.f32 %v1003_v27, %v1536_v55  ;;  %v425_v21 = vmul.f32 %v1004_v19, %v1549_v4  ;;  %v1007_v22 = vunpack.c.l.bf16 %v1006_v57  ;;  %v1008_v30 = vunpack.c.h.bf16 %v1006_v57 }
  0x66   :  { %v382_v46 = vadd.f32 %v380_v52, %v371_v43  ;;  %v383_v61 = vadd.f32 %v381_v54, %v372_v48  ;;  %v1011_v56 = vunpack.c.l.bf16 %v1010_v15  ;;  %v1012_v60 = vunpack.c.h.bf16 %v1010_v15 }
  0x67   :  { %v435_v3 = vmul.f32 %v1007_v22, %v1540_v31  ;;  %v1015_v53 = vunpack.c.l.bf16 %v1014_v29  ;;  %v1016_v28 = vunpack.c.h.bf16 %v1014_v29  ;;  %v436_v42 = vmul.f32 %v1008_v30, %v1551_v45 }
  0x68   :  { %v393_v16 = vadd.f32 %v391_v34, %v382_v46  ;;  %v394_v62 = vadd.f32 %v392_v50, %v383_v61  ;;  %v446_v10 = vmul.f32 %v1011_v56, %v1538_v49  ;;  %v447_v27 = vmul.f32 %v1012_v60, %v1553_v2  ;;  %v1034_v50 = vld [vmem:[#allocation4 + $0x98] sm:$0xff]   ;;  %v1038_v56 = vld [vmem:[#allocation4 + $0xa0] sm:$0xff]  }
  0x69   :  { %v457_v52 = vmul.f32 %v1015_v53, %v1543_v40  ;;  %v458_v54 = vmul.f32 %v1016_v28, %v1546_v18  ;;  %v1019_v57 = vunpack.c.l.bf16 %v1018_v33  ;;  %v1020_v48 = vunpack.c.h.bf16 %v1018_v33  ;;  %v1707_v33 = vld [vmem:[#allocation15_spill] sm:$0xff] }
  0x6a   :  { %v404_v19 = vadd.f32 %v402_v1, %v393_v16  ;;  %v405_v43 = vadd.f32 %v403_v63, %v394_v62  ;;  %v1705_v15 = vunpack.c.l.bf16 %v1391_v8  ;;  %v1706_v22 = vunpack.c.h.bf16 %v1391_v8 }
  0x6b   :  { %v468_v29 = vmul.f32 %v1019_v57, %v1584_v25  ;;  %v1031_v61 = vunpack.c.l.bf16 %v1030_v12  ;;  %v1032_v30 = vunpack.c.h.bf16 %v1030_v12  ;;  %v469_v1 = vmul.f32 %v1020_v48, %v1586_v23 }
  0x6c   :  { %v494_v34 = vmul.f32 %v1705_v15, %v1476_v58  ;;  %v495_v46 = vmul.f32 %v1706_v22, %v1478_v0  ;;  %v415_v60 = vadd.f32 %v413_v37, %v404_v19  ;;  %v416_v53 = vadd.f32 %v414_v44, %v405_v43  ;;  %v1042_v0 = vld [vmem:[#allocation4 + $0xa8] sm:$0xff]   ;;  %v1046_v19 = vld [vmem:[#allocation4 + $0xb0] sm:$0xff]  }
  0x6d   :  { %v505_v16 = vmul.f32 %v1031_v61, %v1482_v59  ;;  %v506_v62 = vmul.f32 %v1032_v30, %v1487_v7  ;;  %v1035_v57 = vunpack.c.l.bf16 %v1034_v50  ;;  %v1036_v8 = vunpack.c.h.bf16 %v1034_v50 }
  0x6e   :  { %v496_v63 = vadd.f32 %v494_v34, %v1410_v41  ;;  %v497_v28 = vadd.f32 %v495_v46, %v1707_v33  ;;  %v426_v15 = vadd.f32 %v424_v20, %v415_v60  ;;  %v427_v58 = vadd.f32 %v425_v21, %v416_v53 }
  0x6f   :  { %v1039_v22 = vunpack.c.l.bf16 %v1038_v56  ;;  %v516_v37 = vmul.f32 %v1035_v57, %v1465_v39  ;;  %v1040_v44 = vunpack.c.h.bf16 %v1038_v56  ;;  %v517_v48 = vmul.f32 %v1036_v8, %v1468_v17 }
  0x70   :  { %v507_v12 = vadd.f32 %v505_v16, %v496_v63  ;;  %v508_v25 = vadd.f32 %v506_v62, %v497_v28  ;;  %v437_v43 = vadd.f32 %v435_v3, %v426_v15  ;;  %v438_v41 = vadd.f32 %v436_v42, %v427_v58  ;;  %v1050_v63 = vld [vmem:[#allocation4 + $0xb8] sm:$0xff]   ;;  %v1054_v42 = vld [vmem:[#allocation4 + $0xc0] sm:$0xff]  }
  0x71   :  { %v527_v34 = vmul.f32 %v1039_v22, %v1492_v11  ;;  %v528_v61 = vmul.f32 %v1040_v44, %v1494_v13  ;;  %v1043_v20 = vunpack.c.l.bf16 %v1042_v0  ;;  %v1044_v21 = vunpack.c.h.bf16 %v1042_v0 }
  0x72   :  { %v518_v46 = vadd.f32 %v516_v37, %v507_v12  ;;  %v448_v50 = vadd.f32 %v446_v10, %v437_v43  ;;  %v449_v30 = vadd.f32 %v447_v27, %v438_v41  ;;  %v519_v60 = vadd.f32 %v517_v48, %v508_v25  ;;  %v1058_v37 = vld [vmem:[#allocation4 + $0xc8] sm:$0xff]  }
  0x73   :  { %v1047_v53 = vunpack.c.l.bf16 %v1046_v19  ;;  %v538_v56 = vmul.f32 %v1043_v20, %v1496_v6  ;;  %v539_v3 = vmul.f32 %v1044_v21, %v1500_v14  ;;  %v1048_v58 = vunpack.c.h.bf16 %v1046_v19  ;;  %v1066_v21 = vld [vmem:[#allocation4 + $0xd8] sm:$0xff]  }
  0x74   :  { %v529_v33 = vadd.f32 %v527_v34, %v518_v46  ;;  %v459_v28 = vadd.f32 %v457_v52, %v448_v50  ;;  %v460_v16 = vadd.f32 %v458_v54, %v449_v30  ;;  %v530_v62 = vadd.f32 %v528_v61, %v519_v60  ;;  %v1062_v54 = vld [vmem:[#allocation4 + $0xd0] sm:$0xff]  }
  0x75   :  { %v549_v57 = vmul.f32 %v1047_v53, %v1522_v9  ;;  %v550_v0 = vmul.f32 %v1048_v58, %v1524_v51  ;;  %v1051_v10 = vunpack.c.l.bf16 %v1050_v63  ;;  %v1052_v27 = vunpack.c.h.bf16 %v1050_v63  ;;  %v1070_v63 = vld [vmem:[#allocation4 + $0xe0] sm:$0xff]  }
  0x76   :  { %v540_v15 = vadd.f32 %v538_v56, %v529_v33  ;;  %v470_v25 = vadd.f32 %v468_v29, %v459_v28  ;;  %v471_v8 = vadd.f32 %v469_v1, %v460_v16  ;;  %v541_v22 = vadd.f32 %v539_v3, %v530_v62 }
  0x77   :  { %v1055_v12 = vunpack.c.l.bf16 %v1054_v42  ;;  %v560_v43 = vmul.f32 %v1051_v10, %v1504_v36  ;;  %v561_v19 = vmul.f32 %v1052_v27, %v1506_v38  ;;  %v1056_v52 = vunpack.c.h.bf16 %v1054_v42  ;;  %v1074_v42 = vld [vmem:[#allocation4 + $0xe8] sm:$0xff]  }
  0x78   :  { %v551_v44 = vadd.f32 %v549_v57, %v540_v15  ;;  %v472_v41 = vadd.f32 0.5, %v470_v25  ;;  %v473_v48 = vadd.f32 0.5, %v471_v8  ;;  %v552_v34 = vadd.f32 %v550_v0, %v541_v22  ;;  %v1078_v25 = vld [vmem:[#allocation4 + $0xf0] sm:$0xff]  }
  0x79   :  { %v571_v46 = vmul.f32 %v1055_v12, %v1512_v35  ;;  %v572_v20 = vmul.f32 %v1056_v52, %v1516_v32  ;;  %v1059_v29 = vunpack.c.l.bf16 %v1058_v37  ;;  %v1060_v1 = vunpack.c.h.bf16 %v1058_v37 }
  0x7a   :  { %v562_v61 = vadd.f32 %v560_v43, %v551_v44  ;;  %v474_v50 = vmax.f32 %v472_v41, 0.0  ;;  %v475_v30 = vmax.f32 %v473_v48, 0.0  ;;  %v563_v60 = vadd.f32 %v561_v19, %v552_v34  ;;  %v1082_v44 = vld [vmem:[#allocation4 + $0xf8] sm:$0xff]   ;;  %v1086_v41 = vld [vmem:[#allocation4 + $0x100] sm:$0xff]  }
  0x7b   :  { %v1063_v53 = vunpack.c.l.bf16 %v1062_v54  ;;  %v582_v56 = vmul.f32 %v1059_v29, %v1526_v26  ;;  %v583_v3 = vmul.f32 %v1060_v1, %v1530_v47  ;;  %v1064_v58 = vunpack.c.h.bf16 %v1062_v54 }
  0x7c   :  { %v573_v33 = vadd.f32 %v571_v46, %v562_v61  ;;  %476 = vst [vmem:[#allocation10] sm:$0xff] %v474_v50  ;;  %v574_v28 = vadd.f32 %v572_v20, %v563_v60  ;;  %v1067_v62 = vunpack.c.l.bf16 %v1066_v21  ;;  %v1068_v57 = vunpack.c.h.bf16 %v1066_v21  ;;  %v1090_v50 = vld [vmem:[#allocation4 + $0x108] sm:$0xff]  }
  0x7d   :  { %v593_v16 = vmul.f32 %v1063_v53, %v1520_v5  ;;  %477 = vst [vmem:[#allocation10 + $0x8] sm:$0xff] %v475_v30  ;;  %v594_v0 = vmul.f32 %v1064_v58, %v1528_v24  ;;  %v1071_v10 = vunpack.c.l.bf16 %v1070_v63  ;;  %v1072_v27 = vunpack.c.h.bf16 %v1070_v63 }
  0x7e   :  { %v584_v15 = vadd.f32 %v582_v56, %v573_v33  ;;  %v585_v8 = vadd.f32 %v583_v3, %v574_v28  ;;  %v604_v22 = vmul.f32 %v1067_v62, %v1536_v55  ;;  %v605_v12 = vmul.f32 %v1068_v57, %v1549_v4  ;;  %v1094_v33 = vld [vmem:[#allocation4 + $0x110] sm:$0xff]   ;;  %v1708_v3 = vld [vmem:[#allocation18_spill] sm:$0xff] }
  0x7f   :  { %v1075_v37 = vunpack.c.l.bf16 %v1074_v42  ;;  %v615_v19 = vmul.f32 %v1071_v10, %v1540_v31  ;;  %v616_v52 = vmul.f32 %v1072_v27, %v1551_v45  ;;  %v1076_v54 = vunpack.c.h.bf16 %v1074_v42 }
  0x80   :  { %v595_v43 = vadd.f32 %v593_v16, %v584_v15  ;;  %v596_v48 = vadd.f32 %v594_v0, %v585_v8  ;;  %v1079_v46 = vunpack.c.l.bf16 %v1078_v25  ;;  %v1080_v61 = vunpack.c.h.bf16 %v1078_v25  ;;  %v1098_v16 = vld [vmem:[#allocation4 + $0x118] sm:$0xff]  }
  0x81   :  { %v626_v34 = vmul.f32 %v1075_v37, %v1538_v49  ;;  %v627_v29 = vmul.f32 %v1076_v54, %v1553_v2  ;;  %v1083_v1 = vunpack.c.l.bf16 %v1082_v44  ;;  %v1084_v21 = vunpack.c.h.bf16 %v1082_v44  ;;  %v1710_v44 = vld [vmem:[#allocation17_spill] sm:$0xff]  ;;  %v1102_v54 = vld [vmem:[#allocation4 + $0x120] sm:$0xff]  }
  0x82   :  { %v606_v20 = vadd.f32 %v604_v22, %v595_v43  ;;  %v607_v30 = vadd.f32 %v605_v12, %v596_v48  ;;  %v637_v60 = vmul.f32 %v1079_v46, %v1543_v40  ;;  %v638_v53 = vmul.f32 %v1080_v61, %v1546_v18  ;;  %v1709_v12 = vld [vmem:[#allocation16_spill] sm:$0xff]  ;;  %v1106_v61 = vld [vmem:[#allocation4 + $0x128] sm:$0xff]  }
  0x83   :  { %v1087_v63 = vunpack.c.l.bf16 %v1086_v41  ;;  %v648_v58 = vmul.f32 %v1083_v1, %v1708_v3  ;;  %v649_v42 = vmul.f32 %v1084_v21, %v1586_v23  ;;  %v1088_v28 = vunpack.c.h.bf16 %v1086_v41 }
  0x84   :  { %v617_v56 = vadd.f32 %v615_v19, %v606_v20  ;;  %v618_v62 = vadd.f32 %v616_v52, %v607_v30  ;;  %v1091_v15 = vunpack.c.l.bf16 %v1090_v50  ;;  %v1092_v0 = vunpack.c.h.bf16 %v1090_v50 }
  0x85   :  { %v666_v57 = vmul.f32 0.2820948, %v1087_v63  ;;  %v667_v27 = vmul.f32 0.2820948, %v1088_v28  ;;  %v1095_v25 = vunpack.c.l.bf16 %v1094_v33  ;;  %v1096_v8 = vunpack.c.h.bf16 %v1094_v33 }
  0x86   :  { %v628_v10 = vadd.f32 %v626_v34, %v617_v56  ;;  %v629_v22 = vadd.f32 %v627_v29, %v618_v62  ;;  %v675_v37 = vmul.f32 %v1091_v15, %v1709_v12  ;;  %v676_v43 = vmul.f32 %v1092_v0, %v1710_v44  ;;  %v1110_v62 = vld [vmem:[#allocation4 + $0x130] sm:$0xff]  }
  0x87   :  { %v1099_v19 = vunpack.c.l.bf16 %v1098_v16  ;;  %v686_v46 = vmul.f32 %v1095_v25, %v1482_v59  ;;  %v687_v41 = vmul.f32 %v1096_v8, %v1487_v7  ;;  %v1100_v52 = vunpack.c.h.bf16 %v1098_v16 }
  0x88   :  { %v639_v48 = vadd.f32 %v637_v60, %v628_v10  ;;  %v640_v20 = vadd.f32 %v638_v53, %v629_v22  ;;  %v677_v1 = vadd.f32 %v675_v37, %v666_v57  ;;  %v678_v34 = vadd.f32 %v676_v43, %v667_v27  ;;  %v1114_v57 = vld [vmem:[#allocation4 + $0x138] sm:$0xff]  }
  0x89   :  { %v697_v21 = vmul.f32 %v1099_v19, %v1465_v39  ;;  %v698_v29 = vmul.f32 %v1100_v52, %v1468_v17  ;;  %v1103_v30 = vunpack.c.l.bf16 %v1102_v54  ;;  %v1104_v63 = vunpack.c.h.bf16 %v1102_v54  ;;  %v1118_v17 = vld [vmem:[#allocation4 + $0x140] sm:$0xff]   ;;  %v1126_v54 = vld [vmem:[#allocation4 + $0x150] sm:$0xff]  }
  0x8a   :  { %v650_v50 = vadd.f32 %v648_v58, %v639_v48  ;;  %v651_v33 = vadd.f32 %v649_v42, %v640_v20  ;;  %v688_v56 = vadd.f32 %v686_v46, %v677_v1  ;;  %v689_v28 = vadd.f32 %v687_v41, %v678_v34  ;;  %v1130_v1 = vld [vmem:[#allocation4 + $0x158] sm:$0xff]  }
  0x8b   :  { %v1107_v60 = vunpack.c.l.bf16 %v1106_v61  ;;  %v708_v7 = vmul.f32 %v1103_v30, %v1492_v11  ;;  %v709_v16 = vmul.f32 %v1104_v63, %v1494_v13  ;;  %v1108_v53 = vunpack.c.h.bf16 %v1106_v61  ;;  %v1122_v11 = vld [vmem:[#allocation4 + $0x148] sm:$0xff]  }
  0x8c   :  { %v652_v59 = vadd.f32 0.5, %v650_v50  ;;  %v653_v15 = vadd.f32 0.5, %v651_v33  ;;  %v699_v0 = vadd.f32 %v697_v21, %v688_v56  ;;  %v700_v39 = vadd.f32 %v698_v29, %v689_v28  ;;  %v1134_v50 = vld [vmem:[#allocation4 + $0x160] sm:$0xff]   ;;  %v1138_v28 = vld [vmem:[#allocation4 + $0x168] sm:$0xff]  }
  0x8d   :  { %v719_v58 = vmul.f32 %v1107_v60, %v1496_v6  ;;  %v720_v42 = vmul.f32 %v1108_v53, %v1500_v14  ;;  %v1111_v27 = vunpack.c.l.bf16 %v1110_v62  ;;  %v1112_v25 = vunpack.c.h.bf16 %v1110_v62 }
  0x8e   :  { %v654_v10 = vmax.f32 %v652_v59, 0.0  ;;  %v655_v8 = vmax.f32 %v653_v15, 0.0  ;;  %v710_v22 = vadd.f32 %v708_v7, %v699_v0  ;;  %v711_v12 = vadd.f32 %v709_v16, %v700_v39 }
  0x8f   :  { %v1115_v37 = vunpack.c.l.bf16 %v1114_v57  ;;  %v730_v13 = vmul.f32 %v1111_v27, %v1522_v9  ;;  %v731_v44 = vmul.f32 %v1112_v25, %v1524_v51  ;;  %v1116_v43 = vunpack.c.h.bf16 %v1114_v57  ;;  %v1142_v57 = vld [vmem:[#allocation4 + $0x170] sm:$0xff]  }
  0x90   :  { %657 = vst [vmem:[#allocation10 + $0x10] sm:$0xff] %v654_v10  ;;  %v1119_v19 = vunpack.c.l.bf16 %v1118_v17  ;;  %v721_v6 = vadd.f32 %v719_v58, %v710_v22  ;;  %v722_v48 = vadd.f32 %v720_v42, %v711_v12  ;;  %v1120_v46 = vunpack.c.h.bf16 %v1118_v17  ;;  %v1146_v17 = vld [vmem:[#allocation4 + $0x178] sm:$0xff]  }
  0x91   :  { %658 = vst [vmem:[#allocation10 + $0x18] sm:$0xff] %v655_v8  ;;  %v741_v14 = vmul.f32 %v1115_v37, %v1504_v36  ;;  %v742_v41 = vmul.f32 %v1116_v43, %v1506_v38  ;;  %v1123_v61 = vunpack.c.l.bf16 %v1122_v11  ;;  %v1124_v20 = vunpack.c.h.bf16 %v1122_v11 }
  0x92   :  { %v752_v52 = vmul.f32 %v1119_v19, %v1512_v35  ;;  %v732_v34 = vadd.f32 %v730_v13, %v721_v6  ;;  %v733_v9 = vadd.f32 %v731_v44, %v722_v48  ;;  %v753_v51 = vmul.f32 %v1120_v46, %v1516_v32 }
  0x93   :  { %v1127_v21 = vunpack.c.l.bf16 %v1126_v54  ;;  %v763_v29 = vmul.f32 %v1123_v61, %v1526_v26  ;;  %v764_v30 = vmul.f32 %v1124_v20, %v1530_v47  ;;  %v1128_v63 = vunpack.c.h.bf16 %v1126_v54 }
  0x94   :  { %v743_v36 = vadd.f32 %v741_v14, %v732_v34  ;;  %v744_v33 = vadd.f32 %v742_v41, %v733_v9  ;;  %v1131_v56 = vunpack.c.l.bf16 %v1130_v1  ;;  %v1132_v38 = vunpack.c.h.bf16 %v1130_v1 }
  0x95   :  { %v1135_v35 = vunpack.c.l.bf16 %v1134_v50  ;;  %v1136_v60 = vunpack.c.h.bf16 %v1134_v50  ;;  %v774_v7 = vmul.f32 %v1127_v21, %v1520_v5  ;;  %v775_v32 = vmul.f32 %v1128_v63, %v1528_v24 }
  0x96   :  { %v754_v62 = vadd.f32 %v752_v52, %v743_v36  ;;  %v755_v59 = vadd.f32 %v753_v51, %v744_v33  ;;  %v1139_v16 = vunpack.c.l.bf16 %v1138_v28  ;;  %v1140_v53 = vunpack.c.h.bf16 %v1138_v28 }
  0x97   :  { %v785_v47 = vmul.f32 %v1131_v56, %v1536_v55  ;;  %v786_v0 = vmul.f32 %v1132_v38, %v1549_v4  ;;  %v796_v39 = vmul.f32 %v1135_v35, %v1540_v31  ;;  %v797_v58 = vmul.f32 %v1136_v60, %v1551_v45 }
  0x98   :  { %v765_v26 = vadd.f32 %v763_v29, %v754_v62  ;;  %v766_v15 = vadd.f32 %v764_v30, %v755_v59  ;;  %v1143_v27 = vunpack.c.l.bf16 %v1142_v57  ;;  %v1144_v5 = vunpack.c.h.bf16 %v1142_v57 }
  0x99   :  { %v807_v24 = vmul.f32 %v1139_v16, %v1538_v49  ;;  %v808_v25 = vmul.f32 %v1140_v53, %v1553_v2  ;;  %v1147_v12 = vunpack.c.l.bf16 %v1146_v17  ;;  %v1148_v37 = vunpack.c.h.bf16 %v1146_v17 }
  0x9a   :  { %v776_v10 = vadd.f32 %v774_v7, %v765_v26  ;;  %v777_v42 = vadd.f32 %v775_v32, %v766_v15  ;;  %v818_v4 = vmul.f32 %v1143_v27, %v1543_v40  ;;  %v819_v31 = vmul.f32 %v1144_v5, %v1546_v18 }
  0x9b   :  { %v829_v44 = vmul.f32 %v1147_v12, %v1708_v3  ;;  %v830_v43 = vmul.f32 %v1148_v37, %v1586_v23 }
  0x9c   :  { %v787_v8 = vadd.f32 %v785_v47, %v776_v10  ;;  %v788_v22 = vadd.f32 %v786_v0, %v777_v42 }
  0x9e   :  { %v798_v55 = vadd.f32 %v796_v39, %v787_v8  ;;  %v799_v11 = vadd.f32 %v797_v58, %v788_v22 }
  0xa0   :  { %v809_v45 = vadd.f32 %v807_v24, %v798_v55  ;;  %v810_v13 = vadd.f32 %v808_v25, %v799_v11 }
  0xa2   :  { %v820_v19 = vadd.f32 %v818_v4, %v809_v45  ;;  %v821_v49 = vadd.f32 %v819_v31, %v810_v13 }
  0xa4   :  { %v831_v54 = vadd.f32 %v829_v44, %v820_v19  ;;  %v832_v2 = vadd.f32 %v830_v43, %v821_v49 }
  0xa6   :  { %v833_v6 = vadd.f32 0.5, %v831_v54  ;;  %v834_v48 = vadd.f32 0.5, %v832_v2 }
  0xa8   :  { %v835_v40 = vmax.f32 %v833_v6, 0.0  ;;  %v836_v18 = vmax.f32 %v834_v48, 0.0 }
  0xaa   :  { %838 = vst [vmem:[#allocation10 + $0x20] sm:$0xff] %v835_v40 }
  0xab   :  { %839 = vst [vmem:[#allocation10 + $0x28] sm:$0xff] %v836_v18 }
  0xac   :  { %852 = dma.vmem_to_hbm [thread:$0]  %s845_s12, 768, %s847_s15, [#allocation6], %s1280_s26, %s1280_s26, %s1281_s27  }
  0xad   :  { %1276 = dma.done.wait [#allocation6], 768  }
  0xae   :  { %1277 = vsyncadd [#allocation6], 4294966528 }
  0xaf   :  { %857 = vsyncpa [#allocation5], 1 }
  0xb0   :  { %858 = vsyncpa [#allocation8], 1 }
  0xb1   :  { %859 = vsyncpa [#allocation6], 1 }

</bundles_post_ra>
